<compile_context>
chip_gen: v7x
topology: tpu7x:2x2x1
jax: 0.10.0
libtpu: 0.0.40
codegen_flags: <defaults>
</compile_context>

<pallas_src>
import math
from functools import partial

import jax
import jax.numpy as jnp
from jax import lax
from jax.experimental import pallas as pl
from jax.experimental.pallas import tpu as pltpu


# ----------------------------------------------------------------------------
# Fused Pallas kernel: CLS insert + PE add + all encoder layers, one batch elem
# ----------------------------------------------------------------------------
def _fused_encoder_kernel(x_ref, cls_ref, pe_ref,
                          lnw_ref, lnb_ref,
                          qkvw_ref, qkvb_ref, projw_ref, projb_ref,
                          fc1w_ref, fc1b_ref, fc2w_ref, fc2b_ref,
                          o_ref, *, num_heads, num_layers):
    S, E = x_ref.shape[1], x_ref.shape[2]      # x already padded: row 0 is the CLS slot
    H = num_heads
    hd = E // H
    scale = hd ** -0.5

    # ---- glue: insert CLS token into row 0, add the positional-encoding row ----
    rows = lax.broadcasted_iota(jnp.int32, (S, E), 0)
    cls_b = jnp.broadcast_to(cls_ref[...], (S, E))
    x = jnp.where(rows == 0, cls_b, x_ref[0]) + pe_ref[0]          # (S, E)

    # ---- encoder layers (static loop; weights stacked along leading L axis) ----
    for l in range(num_layers):
        # hoisted broadcasts: used by BOTH pre-norms of this block (no CSE in-loop)
        ln_w = jnp.broadcast_to(lnw_ref[l], (S, E))
        ln_b = jnp.broadcast_to(lnb_ref[l], (S, E))

        def layer_norm(v):                      # nn.LayerNorm, eps=1e-5, biased var
            mu = jnp.mean(v, axis=-1, keepdims=True)
            c = v - mu
            var = jnp.mean(c * c, axis=-1, keepdims=True)
            return c * lax.rsqrt(var + 1e-5) * ln_w + ln_b

        # ---- multi-headed self-attention (dropout = identity) ----
        h = layer_norm(x)
        qkv = jnp.dot(h, qkvw_ref[l], preferred_element_type=jnp.float32) + qkvb_ref[l]
        q = qkv[:, 0 * E:1 * E] * scale         # fold head-dim scale into q
        k = qkv[:, 1 * E:2 * E]
        v = qkv[:, 2 * E:3 * E]

        # head-batched formulation: (H, S, hd) -> two batched matmuls + one softmax
        qh = jnp.stack([q[:, i * hd:(i + 1) * hd] for i in range(H)], axis=0)
        kh = jnp.stack([k[:, i * hd:(i + 1) * hd] for i in range(H)], axis=0)
        vh = jnp.stack([v[:, i * hd:(i + 1) * hd] for i in range(H)], axis=0)

        s = jnp.einsum('hqd,hkd->hqk', qh, kh,
                       preferred_element_type=jnp.float32)          # (H, S, S)
        s = s - jnp.max(s, axis=-1, keepdims=True)
        e = jnp.exp(s)
        attn = e * pl.reciprocal(jnp.sum(e, axis=-1, keepdims=True), approx=True)
        ctx = jnp.einsum('hqk,hkd->hqd', attn, vh,
                         preferred_element_type=jnp.float32)        # (H, S, hd)
        ctx = jnp.concatenate([ctx[i] for i in range(H)], axis=-1)  # (S, E)

        proj = jnp.dot(ctx, projw_ref[l], preferred_element_type=jnp.float32) + projb_ref[l]
        internal = proj + x

        # ---- FFN with SquaredReLU (expansion=2, dropout = identity) ----
        h2 = layer_norm(internal)               # same LayerNorm params reused (as in PyTorch)
        f1 = jnp.dot(h2, fc1w_ref[l], preferred_element_type=jnp.float32) + fc1b_ref[l]
        f1 = jnp.maximum(f1, 0.0)
        f1 = f1 * f1
        x = jnp.dot(f1, fc2w_ref[l], preferred_element_type=jnp.float32) + fc2b_ref[l] + internal

    o_ref[0] = x


def transformer_encoder(x, params):
    """x: (B, S_in, E) -> (B, S_in + 1, E); whole forward in one pallas_call."""
    B, S_in, E = x.shape
    S = S_in + 1
    L = params["qkv_w"].shape[0]
    H = params["num_heads"]

    # CLSTokenAdder: cls vector = ones * Linear(1, E, bias=False).weight
    cls_row = (params["ones"] * params["cls_w"]).reshape(1, E)
    # PositionalEncoding quirk: pos_e[:batch] broadcast over the sequence axis
    pe = params["pos_e2d"][:B].reshape(B, 1, E)
    # Cheap zero-pad so the kernel's sequence block is a full (S, E) tile;
    # the CLS value itself is written in-kernel (row-0 select).
    x_pad = jnp.pad(x, ((0, 0), (1, 0), (0, 0)))

    const3 = lambda b: (0, 0, 0)
    grid_spec = pltpu.PrefetchScalarGridSpec(
        num_scalar_prefetch=0,
        grid=(B,),
        in_specs=[
            pl.BlockSpec((1, S, E), lambda b: (b, 0, 0)),       # x (padded)
            pl.BlockSpec((1, E), lambda b: (0, 0)),             # cls row
            pl.BlockSpec((1, 1, E), lambda b: (b, 0, 0)),       # PE row for batch b
            pl.BlockSpec((L, 1, E), const3),                    # ln weight (stacked)
            pl.BlockSpec((L, 1, E), const3),                    # ln bias
            pl.BlockSpec((L, E, 3 * E), const3),                # qkv W
            pl.BlockSpec((L, 1, 3 * E), const3),                # qkv b
            pl.BlockSpec((L, E, E), const3),                    # proj W
            pl.BlockSpec((L, 1, E), const3),                    # proj b
            pl.BlockSpec((L, E, 2 * E), const3),                # fc1 W
            pl.BlockSpec((L, 1, 2 * E), const3),                # fc1 b
            pl.BlockSpec((L, 2 * E, E), const3),                # fc2 W
            pl.BlockSpec((L, 1, E), const3),                    # fc2 b
        ],
        out_specs=pl.BlockSpec((1, S, E), lambda b: (b, 0, 0)),
    )
    return pl.pallas_call(
        partial(_fused_encoder_kernel, num_heads=H, num_layers=L),
        out_shape=jax.ShapeDtypeStruct((B, S, E), jnp.float32),
        grid_spec=grid_spec,
        compiler_params=pltpu.CompilerParams(dimension_semantics=("parallel",)),
    )(x_pad, cls_row, pe,
      params["ln_w"], params["ln_b"],
      params["qkv_w"], params["qkv_b"], params["proj_w"], params["proj_b"],
      params["fc1_w"], params["fc1_b"], params["fc2_w"], params["fc2_b"])


# ----------------------------------------------------------------------------
# Deterministic parameter init + pure-JAX reference (sanity check)
# ----------------------------------------------------------------------------
def make_pos_encoding_2d(embed_dim, max_len=64, freq=16000.0):
    position = jnp.arange(max_len, dtype=jnp.float32)[:, None]
    div = jnp.exp(jnp.arange(0, embed_dim, 2, dtype=jnp.float32)
                  * (-math.log(freq) / embed_dim))
    ang = position * div
    pe = jnp.zeros((max_len, embed_dim), jnp.float32)
    pe = pe.at[:, 0::2].set(jnp.sin(ang))
    pe = pe.at[:, 1::2].set(jnp.cos(ang))
    return pe                                                   # (max_len, E)


def init_params(key, num_layers, embed_dim, num_heads):
    def lin(k, fan_in, fan_out):
        k1, k2 = jax.random.split(k)
        w = jax.random.normal(k1, (fan_in, fan_out), jnp.float32) / math.sqrt(fan_in)
        b = jax.random.normal(k2, (1, fan_out), jnp.float32) * 0.01
        return w, b

    keys = jax.random.split(key, 1 + num_layers)
    acc = {n: [] for n in ("ln_w", "ln_b", "qkv_w", "qkv_b", "proj_w", "proj_b",
                           "fc1_w", "fc1_b", "fc2_w", "fc2_b")}
    for i in range(num_layers):
        kq, kp, k1, k2 = jax.random.split(keys[1 + i], 4)
        qkv_w, qkv_b = lin(kq, embed_dim, 3 * embed_dim)
        proj_w, proj_b = lin(kp, embed_dim, embed_dim)
        fc1_w, fc1_b = lin(k1, embed_dim, 2 * embed_dim)
        fc2_w, fc2_b = lin(k2, 2 * embed_dim, embed_dim)
        acc["ln_w"].append(jnp.ones((1, embed_dim), jnp.float32))
        acc["ln_b"].append(jnp.zeros((1, embed_dim), jnp.float32))
        acc["qkv_w"].append(qkv_w); acc["qkv_b"].append(qkv_b)
        acc["proj_w"].append(proj_w); acc["proj_b"].append(proj_b)
        acc["fc1_w"].append(fc1_w); acc["fc1_b"].append(fc1_b)
        acc["fc2_w"].append(fc2_w); acc["fc2_b"].append(fc2_b)
    params = {n: jnp.stack(v, axis=0) for n, v in acc.items()}
    params["num_heads"] = num_heads
    params["cls_w"] = jax.random.normal(keys[0], (embed_dim,), jnp.float32) * 0.1
    params["ones"] = jnp.ones((1,), jnp.float32)
    params["pos_e2d"] = make_pos_encoding_2d(embed_dim)
    return params


def reference_forward(x, params):
    B, S_in, E = x.shape
    S = S_in + 1
    H = params["num_heads"]
    hd = E // H
    L = params["qkv_w"].shape[0]

    cls = jnp.broadcast_to((params["ones"] * params["cls_w"]).reshape(1, 1, E), (B, 1, E))
    x = jnp.concatenate([cls, x], axis=1) + params["pos_e2d"][:B][:, None, :]

    for l in range(L):
        def ln(v):
            mu = jnp.mean(v, axis=-1, keepdims=True)
            var = jnp.mean((v - mu) ** 2, axis=-1, keepdims=True)
            return (v - mu) / jnp.sqrt(var + 1e-5) * params["ln_w"][l] + params["ln_b"][l]

        h = ln(x)
        qkv = (h @ params["qkv_w"][l] + params["qkv_b"][l]).reshape(B, S, 3, H, hd)
        qkv = jnp.transpose(qkv, (2, 0, 3, 1, 4))
        q, k, v = qkv[0], qkv[1], qkv[2]
        s = jnp.einsum("bhsd,bhtd->bhst", q, k) * hd ** -0.5
        a = jax.nn.softmax(s, axis=-1)
        ctx = jnp.einsum("bhst,bhtd->bhsd", a, v)
        ctx = jnp.transpose(ctx, (0, 2, 1, 3)).reshape(B, S, E)
        internal = ctx @ params["proj_w"][l] + params["proj_b"][l] + x
        h2 = ln(internal)
        f1 = jnp.maximum(h2 @ params["fc1_w"][l] + params["fc1_b"][l], 0.0) ** 2
        x = f1 @ params["fc2_w"][l] + params["fc2_b"][l] + internal
    return x


# ----------------------------------------------------------------------------
if __name__ == "__main__":
    B, S_in, E, H, L = 2, 7, 32, 4, 2   # seq becomes 8 after the CLS token
    key = jax.random.PRNGKey(0)
    pkey, xkey = jax.random.split(key)
    params = init_params(pkey, L, E, H)
    x = jax.random.normal(xkey, (B, S_in, E), jnp.float32)

    out = jax.jit(lambda xx: transformer_encoder(xx, params))(x)
    jax.block_until_ready(out)

    assert out.shape == (B, S_in + 1, E)
    ref = reference_forward(x, params)
    # tolerance accounts for the approximate EUP reciprocal in the softmax denom
    assert jnp.allclose(out, ref, rtol=1e-2, atol=1e-2), "Pallas output != reference"
    print("KERNEL_OK")
</pallas_src>

<mosaic_0001>
module attributes {stable_mosaic.version = 11 : i64} {
  func.func @_fused_encoder_kernel(%arg0: i32, %arg1: memref<1x8x32xf32, #tpu.memory_space<vmem>>, %arg2: memref<1x32xf32, #tpu.memory_space<vmem>>, %arg3: memref<1x1x32xf32, #tpu.memory_space<vmem>>, %arg4: memref<2x1x32xf32, #tpu.memory_space<vmem>>, %arg5: memref<2x1x32xf32, #tpu.memory_space<vmem>>, %arg6: memref<2x32x96xf32, #tpu.memory_space<vmem>>, %arg7: memref<2x1x96xf32, #tpu.memory_space<vmem>>, %arg8: memref<2x32x32xf32, #tpu.memory_space<vmem>>, %arg9: memref<2x1x32xf32, #tpu.memory_space<vmem>>, %arg10: memref<2x32x64xf32, #tpu.memory_space<vmem>>, %arg11: memref<2x1x64xf32, #tpu.memory_space<vmem>>, %arg12: memref<2x64x32xf32, #tpu.memory_space<vmem>>, %arg13: memref<2x1x32xf32, #tpu.memory_space<vmem>>, %arg14: memref<1x8x32xf32, #tpu.memory_space<vmem>>) attributes {dimension_semantics = [#tpu.dimension_semantics<parallel>], iteration_bounds = array<i64: 2>, scalar_prefetch = 0 : i64, scratch_operands = 0 : i64, tpu.core_type = #tpu.core_type<tc>, window_params = [{transform_indices = @transform_0, window_bounds = array<i64: 1, 8, 32>}, {pipeline_mode = #tpu.pipeline_mode<synchronous>, transform_indices = @transform_1, window_bounds = array<i64: 1, 32>}, {transform_indices = @transform_2, window_bounds = array<i64: 1, 1, 32>}, {pipeline_mode = #tpu.pipeline_mode<synchronous>, transform_indices = @transform_3, window_bounds = array<i64: 2, 1, 32>}, {pipeline_mode = #tpu.pipeline_mode<synchronous>, transform_indices = @transform_4, window_bounds = array<i64: 2, 1, 32>}, {pipeline_mode = #tpu.pipeline_mode<synchronous>, transform_indices = @transform_5, window_bounds = array<i64: 2, 32, 96>}, {pipeline_mode = #tpu.pipeline_mode<synchronous>, transform_indices = @transform_6, window_bounds = array<i64: 2, 1, 96>}, {pipeline_mode = #tpu.pipeline_mode<synchronous>, transform_indices = @transform_7, window_bounds = array<i64: 2, 32, 32>}, {pipeline_mode = #tpu.pipeline_mode<synchronous>, transform_indices = @transform_8, window_bounds = array<i64: 2, 1, 32>}, {pipeline_mode = #tpu.pipeline_mode<synchronous>, transform_indices = @transform_9, window_bounds = array<i64: 2, 32, 64>}, {pipeline_mode = #tpu.pipeline_mode<synchronous>, transform_indices = @transform_10, window_bounds = array<i64: 2, 1, 64>}, {pipeline_mode = #tpu.pipeline_mode<synchronous>, transform_indices = @transform_11, window_bounds = array<i64: 2, 64, 32>}, {pipeline_mode = #tpu.pipeline_mode<synchronous>, transform_indices = @transform_12, window_bounds = array<i64: 2, 1, 32>}, {transform_indices = @transform_13, window_bounds = array<i64: 1, 8, 32>}]} {
    %0 = tpu.iota {dimensions = array<i32: 0>} : vector<8x32xi32>
    %c0 = arith.constant 0 : index
    %c0_0 = arith.constant 0 : index
    %1 = vector.load %arg2[%c0, %c0_0] : memref<1x32xf32, #tpu.memory_space<vmem>>, vector<1x32xf32>
    %2 = vector.shape_cast %1 : vector<1x32xf32> to vector<1x32xf32>
    %3 = vector.broadcast %2 : vector<1x32xf32> to vector<8x32xf32>
    %c0_i32 = arith.constant 0 : i32
    %4 = vector.broadcast %c0_i32 : i32 to vector<8x32xi32>
    %5 = arith.cmpi eq, %0, %4 : vector<8x32xi32>
    %c0_1 = arith.constant 0 : index
    %c0_2 = arith.constant 0 : index
    %c0_3 = arith.constant 0 : index
    %6 = vector.load %arg1[%c0_1, %c0_2, %c0_3] : memref<1x8x32xf32, #tpu.memory_space<vmem>>, vector<1x8x32xf32>
    %7 = vector.shape_cast %6 : vector<1x8x32xf32> to vector<8x32xf32>
    %8 = arith.select %5, %3, %7 : vector<8x32xi1>, vector<8x32xf32>
    %c0_4 = arith.constant 0 : index
    %c0_5 = arith.constant 0 : index
    %c0_6 = arith.constant 0 : index
    %9 = vector.load %arg3[%c0_4, %c0_5, %c0_6] : memref<1x1x32xf32, #tpu.memory_space<vmem>>, vector<1x1x32xf32>
    %10 = vector.shape_cast %9 : vector<1x1x32xf32> to vector<1x32xf32>
    %11 = vector.broadcast %10 : vector<1x32xf32> to vector<8x32xf32>
    %12 = arith.addf %8, %11 : vector<8x32xf32>
    %c0_7 = arith.constant 0 : index
    %c0_8 = arith.constant 0 : index
    %c0_9 = arith.constant 0 : index
    %13 = vector.load %arg4[%c0_7, %c0_8, %c0_9] : memref<2x1x32xf32, #tpu.memory_space<vmem>>, vector<1x1x32xf32>
    %14 = vector.shape_cast %13 : vector<1x1x32xf32> to vector<1x32xf32>
    %15 = vector.shape_cast %14 : vector<1x32xf32> to vector<1x32xf32>
    %16 = vector.broadcast %15 : vector<1x32xf32> to vector<8x32xf32>
    %c0_10 = arith.constant 0 : index
    %c0_11 = arith.constant 0 : index
    %c0_12 = arith.constant 0 : index
    %17 = vector.load %arg5[%c0_10, %c0_11, %c0_12] : memref<2x1x32xf32, #tpu.memory_space<vmem>>, vector<1x1x32xf32>
    %18 = vector.shape_cast %17 : vector<1x1x32xf32> to vector<1x32xf32>
    %19 = vector.shape_cast %18 : vector<1x32xf32> to vector<1x32xf32>
    %20 = vector.broadcast %19 : vector<1x32xf32> to vector<8x32xf32>
    %cst = arith.constant dense<0.000000e+00> : vector<8xf32>
    %21 = vector.multi_reduction <add>, %12, %cst [1] : vector<8x32xf32> to vector<8xf32>
    %22 = vector.shape_cast %21 : vector<8xf32> to vector<8x1xf32>
    %cst_13 = arith.constant 3.200000e+01 : f32
    %23 = vector.broadcast %cst_13 : f32 to vector<8x1xf32>
    %24 = arith.divf %22, %23 : vector<8x1xf32>
    %25 = vector.broadcast %24 : vector<8x1xf32> to vector<8x32xf32>
    %26 = arith.subf %12, %25 : vector<8x32xf32>
    %27 = arith.mulf %26, %26 : vector<8x32xf32>
    %cst_14 = arith.constant dense<0.000000e+00> : vector<8xf32>
    %28 = vector.multi_reduction <add>, %27, %cst_14 [1] : vector<8x32xf32> to vector<8xf32>
    %29 = vector.shape_cast %28 : vector<8xf32> to vector<8x1xf32>
    %cst_15 = arith.constant 3.200000e+01 : f32
    %30 = vector.broadcast %cst_15 : f32 to vector<8x1xf32>
    %31 = arith.divf %29, %30 : vector<8x1xf32>
    %cst_16 = arith.constant 9.99999974E-6 : f32
    %32 = vector.broadcast %cst_16 : f32 to vector<8x1xf32>
    %33 = arith.addf %31, %32 : vector<8x1xf32>
    %34 = math.rsqrt %33 : vector<8x1xf32>
    %35 = vector.broadcast %34 : vector<8x1xf32> to vector<8x32xf32>
    %36 = arith.mulf %26, %35 : vector<8x32xf32>
    %37 = arith.mulf %36, %16 : vector<8x32xf32>
    %38 = arith.addf %37, %20 : vector<8x32xf32>
    %c0_17 = arith.constant 0 : index
    %c0_18 = arith.constant 0 : index
    %c0_19 = arith.constant 0 : index
    %39 = vector.load %arg6[%c0_17, %c0_18, %c0_19] : memref<2x32x96xf32, #tpu.memory_space<vmem>>, vector<1x32x96xf32>
    %40 = vector.shape_cast %39 : vector<1x32x96xf32> to vector<32x96xf32>
    %cst_20 = arith.constant dense<0.000000e+00> : vector<8x96xf32>
    %41 = tpu.matmul %38, %40, %cst_20 {dimension_numbers = #tpu.dot_dimension_numbers<[1], [0], [0], [1], [0, 0, 1, 1], [], []>} : vector<8x32xf32>, vector<32x96xf32>, vector<8x96xf32> -> vector<8x96xf32>
    %c0_21 = arith.constant 0 : index
    %c0_22 = arith.constant 0 : index
    %c0_23 = arith.constant 0 : index
    %42 = vector.load %arg7[%c0_21, %c0_22, %c0_23] : memref<2x1x96xf32, #tpu.memory_space<vmem>>, vector<1x1x96xf32>
    %43 = vector.shape_cast %42 : vector<1x1x96xf32> to vector<1x96xf32>
    %44 = vector.broadcast %43 : vector<1x96xf32> to vector<8x96xf32>
    %45 = arith.addf %41, %44 : vector<8x96xf32>
    %46 = vector.extract_strided_slice %45 {offsets = [0, 0], sizes = [8, 32], strides = [1, 1]} : vector<8x96xf32> to vector<8x32xf32>
    %cst_24 = arith.constant 0.353553385 : f32
    %47 = vector.broadcast %cst_24 : f32 to vector<8x32xf32>
    %48 = arith.mulf %46, %47 : vector<8x32xf32>
    %49 = vector.extract_strided_slice %45 {offsets = [0, 32], sizes = [8, 32], strides = [1, 1]} : vector<8x96xf32> to vector<8x32xf32>
    %50 = vector.extract_strided_slice %45 {offsets = [0, 64], sizes = [8, 32], strides = [1, 1]} : vector<8x96xf32> to vector<8x32xf32>
    %51 = vector.extract_strided_slice %48 {offsets = [0, 0], sizes = [8, 8], strides = [1, 1]} : vector<8x32xf32> to vector<8x8xf32>
    %52 = vector.extract_strided_slice %48 {offsets = [0, 8], sizes = [8, 8], strides = [1, 1]} : vector<8x32xf32> to vector<8x8xf32>
    %53 = vector.extract_strided_slice %48 {offsets = [0, 16], sizes = [8, 8], strides = [1, 1]} : vector<8x32xf32> to vector<8x8xf32>
    %54 = vector.extract_strided_slice %48 {offsets = [0, 24], sizes = [8, 8], strides = [1, 1]} : vector<8x32xf32> to vector<8x8xf32>
    %55 = vector.shape_cast %51 : vector<8x8xf32> to vector<1x8x8xf32>
    %56 = vector.shape_cast %52 : vector<8x8xf32> to vector<1x8x8xf32>
    %57 = vector.shape_cast %53 : vector<8x8xf32> to vector<1x8x8xf32>
    %58 = vector.shape_cast %54 : vector<8x8xf32> to vector<1x8x8xf32>
    %59 = tpu.concatenate %55, %56, %57, %58 in 0 : vector<1x8x8xf32>, vector<1x8x8xf32>, vector<1x8x8xf32>, vector<1x8x8xf32> -> vector<4x8x8xf32>
    %60 = vector.extract_strided_slice %49 {offsets = [0, 0], sizes = [8, 8], strides = [1, 1]} : vector<8x32xf32> to vector<8x8xf32>
    %61 = vector.extract_strided_slice %49 {offsets = [0, 8], sizes = [8, 8], strides = [1, 1]} : vector<8x32xf32> to vector<8x8xf32>
    %62 = vector.extract_strided_slice %49 {offsets = [0, 16], sizes = [8, 8], strides = [1, 1]} : vector<8x32xf32> to vector<8x8xf32>
    %63 = vector.extract_strided_slice %49 {offsets = [0, 24], sizes = [8, 8], strides = [1, 1]} : vector<8x32xf32> to vector<8x8xf32>
    %64 = vector.shape_cast %60 : vector<8x8xf32> to vector<1x8x8xf32>
    %65 = vector.shape_cast %61 : vector<8x8xf32> to vector<1x8x8xf32>
    %66 = vector.shape_cast %62 : vector<8x8xf32> to vector<1x8x8xf32>
    %67 = vector.shape_cast %63 : vector<8x8xf32> to vector<1x8x8xf32>
    %68 = tpu.concatenate %64, %65, %66, %67 in 0 : vector<1x8x8xf32>, vector<1x8x8xf32>, vector<1x8x8xf32>, vector<1x8x8xf32> -> vector<4x8x8xf32>
    %69 = vector.extract_strided_slice %50 {offsets = [0, 0], sizes = [8, 8], strides = [1, 1]} : vector<8x32xf32> to vector<8x8xf32>
    %70 = vector.extract_strided_slice %50 {offsets = [0, 8], sizes = [8, 8], strides = [1, 1]} : vector<8x32xf32> to vector<8x8xf32>
    %71 = vector.extract_strided_slice %50 {offsets = [0, 16], sizes = [8, 8], strides = [1, 1]} : vector<8x32xf32> to vector<8x8xf32>
    %72 = vector.extract_strided_slice %50 {offsets = [0, 24], sizes = [8, 8], strides = [1, 1]} : vector<8x32xf32> to vector<8x8xf32>
    %73 = vector.shape_cast %69 : vector<8x8xf32> to vector<1x8x8xf32>
    %74 = vector.shape_cast %70 : vector<8x8xf32> to vector<1x8x8xf32>
    %75 = vector.shape_cast %71 : vector<8x8xf32> to vector<1x8x8xf32>
    %76 = vector.shape_cast %72 : vector<8x8xf32> to vector<1x8x8xf32>
    %77 = tpu.concatenate %73, %74, %75, %76 in 0 : vector<1x8x8xf32>, vector<1x8x8xf32>, vector<1x8x8xf32>, vector<1x8x8xf32> -> vector<4x8x8xf32>
    "tpu.trace_start"() <{level = 10 : i32, message = "hqd,hkd->hqk"}> : () -> ()
    %cst_25 = arith.constant dense<0.000000e+00> : vector<4x8x8xf32>
    %78 = tpu.matmul %59, %68, %cst_25 {dimension_numbers = #tpu.dot_dimension_numbers<[2], [2], [1], [1], [0, 0, 0, 1, 1, 1], [0], [0]>} : vector<4x8x8xf32>, vector<4x8x8xf32>, vector<4x8x8xf32> -> vector<4x8x8xf32>
    "tpu.trace_stop"() : () -> ()
    %cst_26 = arith.constant dense<0xFF800000> : vector<4x8xf32>
    %79 = vector.multi_reduction <maximumf>, %78, %cst_26 [2] : vector<4x8x8xf32> to vector<4x8xf32>
    %80 = vector.shape_cast %79 : vector<4x8xf32> to vector<4x8x1xf32>
    %81 = vector.broadcast %80 : vector<4x8x1xf32> to vector<4x8x8xf32>
    %82 = arith.subf %78, %81 : vector<4x8x8xf32>
    %83 = math.exp %82 : vector<4x8x8xf32>
    %cst_27 = arith.constant dense<0.000000e+00> : vector<4x8xf32>
    %84 = vector.multi_reduction <add>, %83, %cst_27 [2] : vector<4x8x8xf32> to vector<4x8xf32>
    %85 = vector.shape_cast %84 : vector<4x8xf32> to vector<4x8x1xf32>
    %86 = tpu.reciprocal %85 {approx = true} : vector<4x8x1xf32> -> vector<4x8x1xf32>
    %87 = vector.broadcast %86 : vector<4x8x1xf32> to vector<4x8x8xf32>
    %88 = arith.mulf %83, %87 : vector<4x8x8xf32>
    "tpu.trace_start"() <{level = 10 : i32, message = "hqk,hkd->hqd"}> : () -> ()
    %cst_28 = arith.constant dense<0.000000e+00> : vector<4x8x8xf32>
    %89 = tpu.matmul %88, %77, %cst_28 {dimension_numbers = #tpu.dot_dimension_numbers<[2], [1], [1], [2], [0, 0, 0, 1, 1, 2], [0], [0]>} : vector<4x8x8xf32>, vector<4x8x8xf32>, vector<4x8x8xf32> -> vector<4x8x8xf32>
    "tpu.trace_stop"() : () -> ()
    %90 = vector.extract_strided_slice %89 {offsets = [0, 0, 0], sizes = [1, 8, 8], strides = [1, 1, 1]} : vector<4x8x8xf32> to vector<1x8x8xf32>
    %91 = vector.shape_cast %90 : vector<1x8x8xf32> to vector<8x8xf32>
    %92 = vector.extract_strided_slice %89 {offsets = [1, 0, 0], sizes = [1, 8, 8], strides = [1, 1, 1]} : vector<4x8x8xf32> to vector<1x8x8xf32>
    %93 = vector.shape_cast %92 : vector<1x8x8xf32> to vector<8x8xf32>
    %94 = vector.extract_strided_slice %89 {offsets = [2, 0, 0], sizes = [1, 8, 8], strides = [1, 1, 1]} : vector<4x8x8xf32> to vector<1x8x8xf32>
    %95 = vector.shape_cast %94 : vector<1x8x8xf32> to vector<8x8xf32>
    %96 = vector.extract_strided_slice %89 {offsets = [3, 0, 0], sizes = [1, 8, 8], strides = [1, 1, 1]} : vector<4x8x8xf32> to vector<1x8x8xf32>
    %97 = vector.shape_cast %96 : vector<1x8x8xf32> to vector<8x8xf32>
    %98 = tpu.concatenate %91, %93, %95, %97 in 1 : vector<8x8xf32>, vector<8x8xf32>, vector<8x8xf32>, vector<8x8xf32> -> vector<8x32xf32>
    %c0_29 = arith.constant 0 : index
    %c0_30 = arith.constant 0 : index
    %c0_31 = arith.constant 0 : index
    %99 = vector.load %arg8[%c0_29, %c0_30, %c0_31] : memref<2x32x32xf32, #tpu.memory_space<vmem>>, vector<1x32x32xf32>
    %100 = vector.shape_cast %99 : vector<1x32x32xf32> to vector<32x32xf32>
    %cst_32 = arith.constant dense<0.000000e+00> : vector<8x32xf32>
    %101 = tpu.matmul %98, %100, %cst_32 {dimension_numbers = #tpu.dot_dimension_numbers<[1], [0], [0], [1], [0, 0, 1, 1], [], []>} : vector<8x32xf32>, vector<32x32xf32>, vector<8x32xf32> -> vector<8x32xf32>
    %c0_33 = arith.constant 0 : index
    %c0_34 = arith.constant 0 : index
    %c0_35 = arith.constant 0 : index
    %102 = vector.load %arg9[%c0_33, %c0_34, %c0_35] : memref<2x1x32xf32, #tpu.memory_space<vmem>>, vector<1x1x32xf32>
    %103 = vector.shape_cast %102 : vector<1x1x32xf32> to vector<1x32xf32>
    %104 = vector.broadcast %103 : vector<1x32xf32> to vector<8x32xf32>
    %105 = arith.addf %101, %104 : vector<8x32xf32>
    %106 = arith.addf %105, %12 : vector<8x32xf32>
    %cst_36 = arith.constant dense<0.000000e+00> : vector<8xf32>
    %107 = vector.multi_reduction <add>, %106, %cst_36 [1] : vector<8x32xf32> to vector<8xf32>
    %108 = vector.shape_cast %107 : vector<8xf32> to vector<8x1xf32>
    %cst_37 = arith.constant 3.200000e+01 : f32
    %109 = vector.broadcast %cst_37 : f32 to vector<8x1xf32>
    %110 = arith.divf %108, %109 : vector<8x1xf32>
    %111 = vector.broadcast %110 : vector<8x1xf32> to vector<8x32xf32>
    %112 = arith.subf %106, %111 : vector<8x32xf32>
    %113 = arith.mulf %112, %112 : vector<8x32xf32>
    %cst_38 = arith.constant dense<0.000000e+00> : vector<8xf32>
    %114 = vector.multi_reduction <add>, %113, %cst_38 [1] : vector<8x32xf32> to vector<8xf32>
    %115 = vector.shape_cast %114 : vector<8xf32> to vector<8x1xf32>
    %cst_39 = arith.constant 3.200000e+01 : f32
    %116 = vector.broadcast %cst_39 : f32 to vector<8x1xf32>
    %117 = arith.divf %115, %116 : vector<8x1xf32>
    %cst_40 = arith.constant 9.99999974E-6 : f32
    %118 = vector.broadcast %cst_40 : f32 to vector<8x1xf32>
    %119 = arith.addf %117, %118 : vector<8x1xf32>
    %120 = math.rsqrt %119 : vector<8x1xf32>
    %121 = vector.broadcast %120 : vector<8x1xf32> to vector<8x32xf32>
    %122 = arith.mulf %112, %121 : vector<8x32xf32>
    %123 = arith.mulf %122, %16 : vector<8x32xf32>
    %124 = arith.addf %123, %20 : vector<8x32xf32>
    %c0_41 = arith.constant 0 : index
    %c0_42 = arith.constant 0 : index
    %c0_43 = arith.constant 0 : index
    %125 = vector.load %arg10[%c0_41, %c0_42, %c0_43] : memref<2x32x64xf32, #tpu.memory_space<vmem>>, vector<1x32x64xf32>
    %126 = vector.shape_cast %125 : vector<1x32x64xf32> to vector<32x64xf32>
    %cst_44 = arith.constant dense<0.000000e+00> : vector<8x64xf32>
    %127 = tpu.matmul %124, %126, %cst_44 {dimension_numbers = #tpu.dot_dimension_numbers<[1], [0], [0], [1], [0, 0, 1, 1], [], []>} : vector<8x32xf32>, vector<32x64xf32>, vector<8x64xf32> -> vector<8x64xf32>
    %c0_45 = arith.constant 0 : index
    %c0_46 = arith.constant 0 : index
    %c0_47 = arith.constant 0 : index
    %128 = vector.load %arg11[%c0_45, %c0_46, %c0_47] : memref<2x1x64xf32, #tpu.memory_space<vmem>>, vector<1x1x64xf32>
    %129 = vector.shape_cast %128 : vector<1x1x64xf32> to vector<1x64xf32>
    %130 = vector.broadcast %129 : vector<1x64xf32> to vector<8x64xf32>
    %131 = arith.addf %127, %130 : vector<8x64xf32>
    %cst_48 = arith.constant 0.000000e+00 : f32
    %132 = vector.broadcast %cst_48 : f32 to vector<8x64xf32>
    %133 = arith.maximumf %131, %132 : vector<8x64xf32>
    %134 = arith.mulf %133, %133 : vector<8x64xf32>
    %c0_49 = arith.constant 0 : index
    %c0_50 = arith.constant 0 : index
    %c0_51 = arith.constant 0 : index
    %135 = vector.load %arg12[%c0_49, %c0_50, %c0_51] : memref<2x64x32xf32, #tpu.memory_space<vmem>>, vector<1x64x32xf32>
    %136 = vector.shape_cast %135 : vector<1x64x32xf32> to vector<64x32xf32>
    %cst_52 = arith.constant dense<0.000000e+00> : vector<8x32xf32>
    %137 = tpu.matmul %134, %136, %cst_52 {dimension_numbers = #tpu.dot_dimension_numbers<[1], [0], [0], [1], [0, 0, 1, 1], [], []>} : vector<8x64xf32>, vector<64x32xf32>, vector<8x32xf32> -> vector<8x32xf32>
    %c0_53 = arith.constant 0 : index
    %c0_54 = arith.constant 0 : index
    %c0_55 = arith.constant 0 : index
    %138 = vector.load %arg13[%c0_53, %c0_54, %c0_55] : memref<2x1x32xf32, #tpu.memory_space<vmem>>, vector<1x1x32xf32>
    %139 = vector.shape_cast %138 : vector<1x1x32xf32> to vector<1x32xf32>
    %140 = vector.broadcast %139 : vector<1x32xf32> to vector<8x32xf32>
    %141 = arith.addf %137, %140 : vector<8x32xf32>
    %142 = arith.addf %141, %106 : vector<8x32xf32>
    %c1 = arith.constant 1 : index
    %c0_56 = arith.constant 0 : index
    %c0_57 = arith.constant 0 : index
    %143 = vector.load %arg4[%c1, %c0_56, %c0_57] : memref<2x1x32xf32, #tpu.memory_space<vmem>>, vector<1x1x32xf32>
    %144 = vector.shape_cast %143 : vector<1x1x32xf32> to vector<1x32xf32>
    %145 = vector.shape_cast %144 : vector<1x32xf32> to vector<1x32xf32>
    %146 = vector.broadcast %145 : vector<1x32xf32> to vector<8x32xf32>
    %c1_58 = arith.constant 1 : index
    %c0_59 = arith.constant 0 : index
    %c0_60 = arith.constant 0 : index
    %147 = vector.load %arg5[%c1_58, %c0_59, %c0_60] : memref<2x1x32xf32, #tpu.memory_space<vmem>>, vector<1x1x32xf32>
    %148 = vector.shape_cast %147 : vector<1x1x32xf32> to vector<1x32xf32>
    %149 = vector.shape_cast %148 : vector<1x32xf32> to vector<1x32xf32>
    %150 = vector.broadcast %149 : vector<1x32xf32> to vector<8x32xf32>
    %cst_61 = arith.constant dense<0.000000e+00> : vector<8xf32>
    %151 = vector.multi_reduction <add>, %142, %cst_61 [1] : vector<8x32xf32> to vector<8xf32>
    %152 = vector.shape_cast %151 : vector<8xf32> to vector<8x1xf32>
    %cst_62 = arith.constant 3.200000e+01 : f32
    %153 = vector.broadcast %cst_62 : f32 to vector<8x1xf32>
    %154 = arith.divf %152, %153 : vector<8x1xf32>
    %155 = vector.broadcast %154 : vector<8x1xf32> to vector<8x32xf32>
    %156 = arith.subf %142, %155 : vector<8x32xf32>
    %157 = arith.mulf %156, %156 : vector<8x32xf32>
    %cst_63 = arith.constant dense<0.000000e+00> : vector<8xf32>
    %158 = vector.multi_reduction <add>, %157, %cst_63 [1] : vector<8x32xf32> to vector<8xf32>
    %159 = vector.shape_cast %158 : vector<8xf32> to vector<8x1xf32>
    %cst_64 = arith.constant 3.200000e+01 : f32
    %160 = vector.broadcast %cst_64 : f32 to vector<8x1xf32>
    %161 = arith.divf %159, %160 : vector<8x1xf32>
    %cst_65 = arith.constant 9.99999974E-6 : f32
    %162 = vector.broadcast %cst_65 : f32 to vector<8x1xf32>
    %163 = arith.addf %161, %162 : vector<8x1xf32>
    %164 = math.rsqrt %163 : vector<8x1xf32>
    %165 = vector.broadcast %164 : vector<8x1xf32> to vector<8x32xf32>
    %166 = arith.mulf %156, %165 : vector<8x32xf32>
    %167 = arith.mulf %166, %146 : vector<8x32xf32>
    %168 = arith.addf %167, %150 : vector<8x32xf32>
    %c1_66 = arith.constant 1 : index
    %c0_67 = arith.constant 0 : index
    %c0_68 = arith.constant 0 : index
    %169 = vector.load %arg6[%c1_66, %c0_67, %c0_68] : memref<2x32x96xf32, #tpu.memory_space<vmem>>, vector<1x32x96xf32>
    %170 = vector.shape_cast %169 : vector<1x32x96xf32> to vector<32x96xf32>
    %cst_69 = arith.constant dense<0.000000e+00> : vector<8x96xf32>
    %171 = tpu.matmul %168, %170, %cst_69 {dimension_numbers = #tpu.dot_dimension_numbers<[1], [0], [0], [1], [0, 0, 1, 1], [], []>} : vector<8x32xf32>, vector<32x96xf32>, vector<8x96xf32> -> vector<8x96xf32>
    %c1_70 = arith.constant 1 : index
    %c0_71 = arith.constant 0 : index
    %c0_72 = arith.constant 0 : index
    %172 = vector.load %arg7[%c1_70, %c0_71, %c0_72] : memref<2x1x96xf32, #tpu.memory_space<vmem>>, vector<1x1x96xf32>
    %173 = vector.shape_cast %172 : vector<1x1x96xf32> to vector<1x96xf32>
    %174 = vector.broadcast %173 : vector<1x96xf32> to vector<8x96xf32>
    %175 = arith.addf %171, %174 : vector<8x96xf32>
    %176 = vector.extract_strided_slice %175 {offsets = [0, 0], sizes = [8, 32], strides = [1, 1]} : vector<8x96xf32> to vector<8x32xf32>
    %cst_73 = arith.constant 0.353553385 : f32
    %177 = vector.broadcast %cst_73 : f32 to vector<8x32xf32>
    %178 = arith.mulf %176, %177 : vector<8x32xf32>
    %179 = vector.extract_strided_slice %175 {offsets = [0, 32], sizes = [8, 32], strides = [1, 1]} : vector<8x96xf32> to vector<8x32xf32>
    %180 = vector.extract_strided_slice %175 {offsets = [0, 64], sizes = [8, 32], strides = [1, 1]} : vector<8x96xf32> to vector<8x32xf32>
    %181 = vector.extract_strided_slice %178 {offsets = [0, 0], sizes = [8, 8], strides = [1, 1]} : vector<8x32xf32> to vector<8x8xf32>
    %182 = vector.extract_strided_slice %178 {offsets = [0, 8], sizes = [8, 8], strides = [1, 1]} : vector<8x32xf32> to vector<8x8xf32>
    %183 = vector.extract_strided_slice %178 {offsets = [0, 16], sizes = [8, 8], strides = [1, 1]} : vector<8x32xf32> to vector<8x8xf32>
    %184 = vector.extract_strided_slice %178 {offsets = [0, 24], sizes = [8, 8], strides = [1, 1]} : vector<8x32xf32> to vector<8x8xf32>
    %185 = vector.shape_cast %181 : vector<8x8xf32> to vector<1x8x8xf32>
    %186 = vector.shape_cast %182 : vector<8x8xf32> to vector<1x8x8xf32>
    %187 = vector.shape_cast %183 : vector<8x8xf32> to vector<1x8x8xf32>
    %188 = vector.shape_cast %184 : vector<8x8xf32> to vector<1x8x8xf32>
    %189 = tpu.concatenate %185, %186, %187, %188 in 0 : vector<1x8x8xf32>, vector<1x8x8xf32>, vector<1x8x8xf32>, vector<1x8x8xf32> -> vector<4x8x8xf32>
    %190 = vector.extract_strided_slice %179 {offsets = [0, 0], sizes = [8, 8], strides = [1, 1]} : vector<8x32xf32> to vector<8x8xf32>
    %191 = vector.extract_strided_slice %179 {offsets = [0, 8], sizes = [8, 8], strides = [1, 1]} : vector<8x32xf32> to vector<8x8xf32>
    %192 = vector.extract_strided_slice %179 {offsets = [0, 16], sizes = [8, 8], strides = [1, 1]} : vector<8x32xf32> to vector<8x8xf32>
    %193 = vector.extract_strided_slice %179 {offsets = [0, 24], sizes = [8, 8], strides = [1, 1]} : vector<8x32xf32> to vector<8x8xf32>
    %194 = vector.shape_cast %190 : vector<8x8xf32> to vector<1x8x8xf32>
    %195 = vector.shape_cast %191 : vector<8x8xf32> to vector<1x8x8xf32>
    %196 = vector.shape_cast %192 : vector<8x8xf32> to vector<1x8x8xf32>
    %197 = vector.shape_cast %193 : vector<8x8xf32> to vector<1x8x8xf32>
    %198 = tpu.concatenate %194, %195, %196, %197 in 0 : vector<1x8x8xf32>, vector<1x8x8xf32>, vector<1x8x8xf32>, vector<1x8x8xf32> -> vector<4x8x8xf32>
    %199 = vector.extract_strided_slice %180 {offsets = [0, 0], sizes = [8, 8], strides = [1, 1]} : vector<8x32xf32> to vector<8x8xf32>
    %200 = vector.extract_strided_slice %180 {offsets = [0, 8], sizes = [8, 8], strides = [1, 1]} : vector<8x32xf32> to vector<8x8xf32>
    %201 = vector.extract_strided_slice %180 {offsets = [0, 16], sizes = [8, 8], strides = [1, 1]} : vector<8x32xf32> to vector<8x8xf32>
    %202 = vector.extract_strided_slice %180 {offsets = [0, 24], sizes = [8, 8], strides = [1, 1]} : vector<8x32xf32> to vector<8x8xf32>
    %203 = vector.shape_cast %199 : vector<8x8xf32> to vector<1x8x8xf32>
    %204 = vector.shape_cast %200 : vector<8x8xf32> to vector<1x8x8xf32>
    %205 = vector.shape_cast %201 : vector<8x8xf32> to vector<1x8x8xf32>
    %206 = vector.shape_cast %202 : vector<8x8xf32> to vector<1x8x8xf32>
    %207 = tpu.concatenate %203, %204, %205, %206 in 0 : vector<1x8x8xf32>, vector<1x8x8xf32>, vector<1x8x8xf32>, vector<1x8x8xf32> -> vector<4x8x8xf32>
    "tpu.trace_start"() <{level = 10 : i32, message = "hqd,hkd->hqk"}> : () -> ()
    %cst_74 = arith.constant dense<0.000000e+00> : vector<4x8x8xf32>
    %208 = tpu.matmul %189, %198, %cst_74 {dimension_numbers = #tpu.dot_dimension_numbers<[2], [2], [1], [1], [0, 0, 0, 1, 1, 1], [0], [0]>} : vector<4x8x8xf32>, vector<4x8x8xf32>, vector<4x8x8xf32> -> vector<4x8x8xf32>
    "tpu.trace_stop"() : () -> ()
    %cst_75 = arith.constant dense<0xFF800000> : vector<4x8xf32>
    %209 = vector.multi_reduction <maximumf>, %208, %cst_75 [2] : vector<4x8x8xf32> to vector<4x8xf32>
    %210 = vector.shape_cast %209 : vector<4x8xf32> to vector<4x8x1xf32>
    %211 = vector.broadcast %210 : vector<4x8x1xf32> to vector<4x8x8xf32>
    %212 = arith.subf %208, %211 : vector<4x8x8xf32>
    %213 = math.exp %212 : vector<4x8x8xf32>
    %cst_76 = arith.constant dense<0.000000e+00> : vector<4x8xf32>
    %214 = vector.multi_reduction <add>, %213, %cst_76 [2] : vector<4x8x8xf32> to vector<4x8xf32>
    %215 = vector.shape_cast %214 : vector<4x8xf32> to vector<4x8x1xf32>
    %216 = tpu.reciprocal %215 {approx = true} : vector<4x8x1xf32> -> vector<4x8x1xf32>
    %217 = vector.broadcast %216 : vector<4x8x1xf32> to vector<4x8x8xf32>
    %218 = arith.mulf %213, %217 : vector<4x8x8xf32>
    "tpu.trace_start"() <{level = 10 : i32, message = "hqk,hkd->hqd"}> : () -> ()
    %cst_77 = arith.constant dense<0.000000e+00> : vector<4x8x8xf32>
    %219 = tpu.matmul %218, %207, %cst_77 {dimension_numbers = #tpu.dot_dimension_numbers<[2], [1], [1], [2], [0, 0, 0, 1, 1, 2], [0], [0]>} : vector<4x8x8xf32>, vector<4x8x8xf32>, vector<4x8x8xf32> -> vector<4x8x8xf32>
    "tpu.trace_stop"() : () -> ()
    %220 = vector.extract_strided_slice %219 {offsets = [0, 0, 0], sizes = [1, 8, 8], strides = [1, 1, 1]} : vector<4x8x8xf32> to vector<1x8x8xf32>
    %221 = vector.shape_cast %220 : vector<1x8x8xf32> to vector<8x8xf32>
    %222 = vector.extract_strided_slice %219 {offsets = [1, 0, 0], sizes = [1, 8, 8], strides = [1, 1, 1]} : vector<4x8x8xf32> to vector<1x8x8xf32>
    %223 = vector.shape_cast %222 : vector<1x8x8xf32> to vector<8x8xf32>
    %224 = vector.extract_strided_slice %219 {offsets = [2, 0, 0], sizes = [1, 8, 8], strides = [1, 1, 1]} : vector<4x8x8xf32> to vector<1x8x8xf32>
    %225 = vector.shape_cast %224 : vector<1x8x8xf32> to vector<8x8xf32>
    %226 = vector.extract_strided_slice %219 {offsets = [3, 0, 0], sizes = [1, 8, 8], strides = [1, 1, 1]} : vector<4x8x8xf32> to vector<1x8x8xf32>
    %227 = vector.shape_cast %226 : vector<1x8x8xf32> to vector<8x8xf32>
    %228 = tpu.concatenate %221, %223, %225, %227 in 1 : vector<8x8xf32>, vector<8x8xf32>, vector<8x8xf32>, vector<8x8xf32> -> vector<8x32xf32>
    %c1_78 = arith.constant 1 : index
    %c0_79 = arith.constant 0 : index
    %c0_80 = arith.constant 0 : index
    %229 = vector.load %arg8[%c1_78, %c0_79, %c0_80] : memref<2x32x32xf32, #tpu.memory_space<vmem>>, vector<1x32x32xf32>
    %230 = vector.shape_cast %229 : vector<1x32x32xf32> to vector<32x32xf32>
    %cst_81 = arith.constant dense<0.000000e+00> : vector<8x32xf32>
    %231 = tpu.matmul %228, %230, %cst_81 {dimension_numbers = #tpu.dot_dimension_numbers<[1], [0], [0], [1], [0, 0, 1, 1], [], []>} : vector<8x32xf32>, vector<32x32xf32>, vector<8x32xf32> -> vector<8x32xf32>
    %c1_82 = arith.constant 1 : index
    %c0_83 = arith.constant 0 : index
    %c0_84 = arith.constant 0 : index
    %232 = vector.load %arg9[%c1_82, %c0_83, %c0_84] : memref<2x1x32xf32, #tpu.memory_space<vmem>>, vector<1x1x32xf32>
    %233 = vector.shape_cast %232 : vector<1x1x32xf32> to vector<1x32xf32>
    %234 = vector.broadcast %233 : vector<1x32xf32> to vector<8x32xf32>
    %235 = arith.addf %231, %234 : vector<8x32xf32>
    %236 = arith.addf %235, %142 : vector<8x32xf32>
    %cst_85 = arith.constant dense<0.000000e+00> : vector<8xf32>
    %237 = vector.multi_reduction <add>, %236, %cst_85 [1] : vector<8x32xf32> to vector<8xf32>
    %238 = vector.shape_cast %237 : vector<8xf32> to vector<8x1xf32>
    %cst_86 = arith.constant 3.200000e+01 : f32
    %239 = vector.broadcast %cst_86 : f32 to vector<8x1xf32>
    %240 = arith.divf %238, %239 : vector<8x1xf32>
    %241 = vector.broadcast %240 : vector<8x1xf32> to vector<8x32xf32>
    %242 = arith.subf %236, %241 : vector<8x32xf32>
    %243 = arith.mulf %242, %242 : vector<8x32xf32>
    %cst_87 = arith.constant dense<0.000000e+00> : vector<8xf32>
    %244 = vector.multi_reduction <add>, %243, %cst_87 [1] : vector<8x32xf32> to vector<8xf32>
    %245 = vector.shape_cast %244 : vector<8xf32> to vector<8x1xf32>
    %cst_88 = arith.constant 3.200000e+01 : f32
    %246 = vector.broadcast %cst_88 : f32 to vector<8x1xf32>
    %247 = arith.divf %245, %246 : vector<8x1xf32>
    %cst_89 = arith.constant 9.99999974E-6 : f32
    %248 = vector.broadcast %cst_89 : f32 to vector<8x1xf32>
    %249 = arith.addf %247, %248 : vector<8x1xf32>
    %250 = math.rsqrt %249 : vector<8x1xf32>
    %251 = vector.broadcast %250 : vector<8x1xf32> to vector<8x32xf32>
    %252 = arith.mulf %242, %251 : vector<8x32xf32>
    %253 = arith.mulf %252, %146 : vector<8x32xf32>
    %254 = arith.addf %253, %150 : vector<8x32xf32>
    %c1_90 = arith.constant 1 : index
    %c0_91 = arith.constant 0 : index
    %c0_92 = arith.constant 0 : index
    %255 = vector.load %arg10[%c1_90, %c0_91, %c0_92] : memref<2x32x64xf32, #tpu.memory_space<vmem>>, vector<1x32x64xf32>
    %256 = vector.shape_cast %255 : vector<1x32x64xf32> to vector<32x64xf32>
    %cst_93 = arith.constant dense<0.000000e+00> : vector<8x64xf32>
    %257 = tpu.matmul %254, %256, %cst_93 {dimension_numbers = #tpu.dot_dimension_numbers<[1], [0], [0], [1], [0, 0, 1, 1], [], []>} : vector<8x32xf32>, vector<32x64xf32>, vector<8x64xf32> -> vector<8x64xf32>
    %c1_94 = arith.constant 1 : index
    %c0_95 = arith.constant 0 : index
    %c0_96 = arith.constant 0 : index
    %258 = vector.load %arg11[%c1_94, %c0_95, %c0_96] : memref<2x1x64xf32, #tpu.memory_space<vmem>>, vector<1x1x64xf32>
    %259 = vector.shape_cast %258 : vector<1x1x64xf32> to vector<1x64xf32>
    %260 = vector.broadcast %259 : vector<1x64xf32> to vector<8x64xf32>
    %261 = arith.addf %257, %260 : vector<8x64xf32>
    %cst_97 = arith.constant 0.000000e+00 : f32
    %262 = vector.broadcast %cst_97 : f32 to vector<8x64xf32>
    %263 = arith.maximumf %261, %262 : vector<8x64xf32>
    %264 = arith.mulf %263, %263 : vector<8x64xf32>
    %c1_98 = arith.constant 1 : index
    %c0_99 = arith.constant 0 : index
    %c0_100 = arith.constant 0 : index
    %265 = vector.load %arg12[%c1_98, %c0_99, %c0_100] : memref<2x64x32xf32, #tpu.memory_space<vmem>>, vector<1x64x32xf32>
    %266 = vector.shape_cast %265 : vector<1x64x32xf32> to vector<64x32xf32>
    %cst_101 = arith.constant dense<0.000000e+00> : vector<8x32xf32>
    %267 = tpu.matmul %264, %266, %cst_101 {dimension_numbers = #tpu.dot_dimension_numbers<[1], [0], [0], [1], [0, 0, 1, 1], [], []>} : vector<8x64xf32>, vector<64x32xf32>, vector<8x32xf32> -> vector<8x32xf32>
    %c1_102 = arith.constant 1 : index
    %c0_103 = arith.constant 0 : index
    %c0_104 = arith.constant 0 : index
    %268 = vector.load %arg13[%c1_102, %c0_103, %c0_104] : memref<2x1x32xf32, #tpu.memory_space<vmem>>, vector<1x1x32xf32>
    %269 = vector.shape_cast %268 : vector<1x1x32xf32> to vector<1x32xf32>
    %270 = vector.broadcast %269 : vector<1x32xf32> to vector<8x32xf32>
    %271 = arith.addf %267, %270 : vector<8x32xf32>
    %272 = arith.addf %271, %236 : vector<8x32xf32>
    %c0_105 = arith.constant 0 : index
    %c0_106 = arith.constant 0 : index
    %c0_107 = arith.constant 0 : index
    %273 = vector.load %arg14[%c0_105, %c0_106, %c0_107] : memref<1x8x32xf32, #tpu.memory_space<vmem>>, vector<1x8x32xf32>
    %274 = vector.shape_cast %273 : vector<1x8x32xf32> to vector<8x32xf32>
    %275 = vector.shape_cast %272 : vector<8x32xf32> to vector<1x8x32xf32>
    tpu.vector_store %arg14[%c0_105, %c0_106, %c0_107], %275 {strides = array<i32>} : memref<1x8x32xf32, #tpu.memory_space<vmem>>, vector<1x8x32xf32>,
    return
  }
  func.func @transform_0(%arg0: i32) -> (i32, i32, i32) {
    %c0_i32 = arith.constant 0 : i32
    %c0_i32_0 = arith.constant 0 : i32
    %c0_i32_1 = arith.constant 0 : i32
    return %arg0, %c0_i32, %c0_i32_0 : i32, i32, i32
  }
  func.func @transform_1(%arg0: i32) -> (i32, i32) {
    %c0_i32 = arith.constant 0 : i32
    %c0_i32_0 = arith.constant 0 : i32
    %c0_i32_1 = arith.constant 0 : i32
    return %c0_i32, %c0_i32_0 : i32, i32
  }
  func.func @transform_2(%arg0: i32) -> (i32, i32, i32) {
    %c0_i32 = arith.constant 0 : i32
    %c0_i32_0 = arith.constant 0 : i32
    %c0_i32_1 = arith.constant 0 : i32
    return %arg0, %c0_i32, %c0_i32_0 : i32, i32, i32
  }
  func.func @transform_3(%arg0: i32) -> (i32, i32, i32) {
    %c0_i32 = arith.constant 0 : i32
    %c0_i32_0 = arith.constant 0 : i32
    %c0_i32_1 = arith.constant 0 : i32
    %c0_i32_2 = arith.constant 0 : i32
    return %c0_i32, %c0_i32_0, %c0_i32_1 : i32, i32, i32
  }
  func.func @transform_4(%arg0: i32) -> (i32, i32, i32) {
    %c0_i32 = arith.constant 0 : i32
    %c0_i32_0 = arith.constant 0 : i32
    %c0_i32_1 = arith.constant 0 : i32
    %c0_i32_2 = arith.constant 0 : i32
    return %c0_i32, %c0_i32_0, %c0_i32_1 : i32, i32, i32
  }
  func.func @transform_5(%arg0: i32) -> (i32, i32, i32) {
    %c0_i32 = arith.constant 0 : i32
    %c0_i32_0 = arith.constant 0 : i32
    %c0_i32_1 = arith.constant 0 : i32
    %c0_i32_2 = arith.constant 0 : i32
    return %c0_i32, %c0_i32_0, %c0_i32_1 : i32, i32, i32
  }
  func.func @transform_6(%arg0: i32) -> (i32, i32, i32) {
    %c0_i32 = arith.constant 0 : i32
    %c0_i32_0 = arith.constant 0 : i32
    %c0_i32_1 = arith.constant 0 : i32
    %c0_i32_2 = arith.constant 0 : i32
    return %c0_i32, %c0_i32_0, %c0_i32_1 : i32, i32, i32
  }
  func.func @transform_7(%arg0: i32) -> (i32, i32, i32) {
    %c0_i32 = arith.constant 0 : i32
    %c0_i32_0 = arith.constant 0 : i32
    %c0_i32_1 = arith.constant 0 : i32
    %c0_i32_2 = arith.constant 0 : i32
    return %c0_i32, %c0_i32_0, %c0_i32_1 : i32, i32, i32
  }
  func.func @transform_8(%arg0: i32) -> (i32, i32, i32) {
    %c0_i32 = arith.constant 0 : i32
    %c0_i32_0 = arith.constant 0 : i32
    %c0_i32_1 = arith.constant 0 : i32
    %c0_i32_2 = arith.constant 0 : i32
    return %c0_i32, %c0_i32_0, %c0_i32_1 : i32, i32, i32
  }
  func.func @transform_9(%arg0: i32) -> (i32, i32, i32) {
    %c0_i32 = arith.constant 0 : i32
    %c0_i32_0 = arith.constant 0 : i32
    %c0_i32_1 = arith.constant 0 : i32
    %c0_i32_2 = arith.constant 0 : i32
    return %c0_i32, %c0_i32_0, %c0_i32_1 : i32, i32, i32
  }
  func.func @transform_10(%arg0: i32) -> (i32, i32, i32) {
    %c0_i32 = arith.constant 0 : i32
    %c0_i32_0 = arith.constant 0 : i32
    %c0_i32_1 = arith.constant 0 : i32
    %c0_i32_2 = arith.constant 0 : i32
    return %c0_i32, %c0_i32_0, %c0_i32_1 : i32, i32, i32
  }
  func.func @transform_11(%arg0: i32) -> (i32, i32, i32) {
    %c0_i32 = arith.constant 0 : i32
    %c0_i32_0 = arith.constant 0 : i32
    %c0_i32_1 = arith.constant 0 : i32
    %c0_i32_2 = arith.constant 0 : i32
    return %c0_i32, %c0_i32_0, %c0_i32_1 : i32, i32, i32
  }
  func.func @transform_12(%arg0: i32) -> (i32, i32, i32) {
    %c0_i32 = arith.constant 0 : i32
    %c0_i32_0 = arith.constant 0 : i32
    %c0_i32_1 = arith.constant 0 : i32
    %c0_i32_2 = arith.constant 0 : i32
    return %c0_i32, %c0_i32_0, %c0_i32_1 : i32, i32, i32
  }
  func.func @transform_13(%arg0: i32) -> (i32, i32, i32) {
    %c0_i32 = arith.constant 0 : i32
    %c0_i32_0 = arith.constant 0 : i32
    %c0_i32_1 = arith.constant 0 : i32
    return %arg0, %c0_i32, %c0_i32_0 : i32, i32, i32
  }
}

</mosaic_0001>

<bundles_post_ra>
// kernel: _lambda_.1
= control target key start
LH: loop header
LB: loop body
LE: loop exit
PB: predicated region body
PF: predicated region fallthrough
CT: control target
= control target key end

     0   :  { %s4048_s0 = inlined_call_operand.vmem [shape: f32[2,8,32], index: 0, kind: input, shape index: {}]   ;;  %s4049_s1 = inlined_call_operand.vmem [shape: f32[1,32], index: 1, kind: input, shape index: {}]   ;;  %s4050_s2 = inlined_call_operand.vmem [shape: f32[2,1,32], index: 2, kind: input, shape index: {}]   ;;  %s4051_s3 = inlined_call_operand.vmem [shape: f32[2,1,32], index: 3, kind: input, shape index: {}]   ;;  %s4052_s4 = inlined_call_operand.vmem [shape: f32[2,1,32], index: 4, kind: input, shape index: {}]   ;;  %s4053_s5 = inlined_call_operand.hbm [shape: f32[2,32,96], index: 5, kind: input, shape index: {}]   ;;  %s4054_s6 = inlined_call_operand.vmem [shape: f32[2,1,96], index: 6, kind: input, shape index: {}]   ;;  %s4055_s7 = inlined_call_operand.hbm [shape: f32[2,32,32], index: 7, kind: input, shape index: {}]   ;;  %s4056_s8 = inlined_call_operand.vmem [shape: f32[2,1,32], index: 8, kind: input, shape index: {}]   ;;  %s4057_s9 = inlined_call_operand.vmem [shape: f32[2,32,64], index: 9, kind: input, shape index: {}]   ;;  %s4058_s10 = inlined_call_operand.vmem [shape: f32[2,1,64], index: 10, kind: input, shape index: {}]   ;;  %s4059_s11 = inlined_call_operand.hbm [shape: f32[2,64,32], index: 11, kind: input, shape index: {}]   ;;  %s4060_s12 = inlined_call_operand.vmem [shape: f32[2,1,32], index: 12, kind: input, shape index: {}]   ;;  %s4061_s13 = inlined_call_operand.hbm [shape: f32[2,8,32], index: 13, kind: output, shape index: {}]  }
   0x1   :  { %4075 = sst [smem:[#allocation20_spill]] %s4061_s13 }
   0x2   :  { %18 = vsyncpa [#allocation3], 0 }
   0x3   :  { %19 = vsyncpa [#allocation6], 0 }
   0x4   :  { %20 = vsyncpa [#allocation4], 0 }
   0x5   :  { %22 = vsyncpa [#allocation4 + $0x1], 0  ;;  %s3546_s25 = smov 0   ;;  %s3548_s26 = smov 0  }
   0x6   :  { %s3550_s27 = smov 0   ;;  %s3552_s28 = smov 0  }
   0x7 LB: > { %4076 = sst [smem:[#allocation12_spill]] %s3445_s25  ;;  %s3567_s29 = sadd.s32 4294967295, %s3457_s28   ;;  %s3457_s28 = sphi %s3552_s28, %s4102_s28   ;;  %s3453_s27 = sphi %s3550_s27, %s4105_s27   ;;  %s3449_s26 = sphi %s3548_s26, %s4104_s26   ;;  %s3445_s25 = sphi %s3546_s25, %s4103_s25  }
   0x8   : > { %4077 = sst [smem:[#allocation13_spill]] %s3449_s26  ;;  %s2784_s30 = sadd.s32 4294967294, %s3457_s28  }
   0x9   : > { %4078 = sst [smem:[#allocation14_spill]] %s3453_s27  ;;  %s3571_s14 = sadd.s32 1, %s3457_s28  }
   0xa   : > { %4079 = sst [smem:[#allocation15_spill]] %s3457_s28  ;;  %s318_s15 = sadd.s32 1, %s3453_s27 }
   0xb   : > { %4080 = sst [smem:[#allocation16_spill]] %s3571_s14  ;;  %s315_s16 = ssub.s32 %s3457_s28, %s3571_s14 }
   0xc   : > { %p328_p0 = scmp.ne.s32.totalorder %s3453_s27, %s3449_s26  ;;  %p316_p1 = scmp.eq.s32.totalorder %s315_s16, 0 }
   0xd   : > { %p329_p2 = scmp.eq.s32.totalorder %s3567_s29, 1  ;;  %p334_p3 = scmp.ne.s32.totalorder %s3449_s26, %s3445_s25 }
   0xe   : > { %p335_p4 = scmp.eq.s32.totalorder %s2784_s30, 1  ;;  %p2785_p7 = scmp.ge.s32.totalorder %s3457_s28, 1 }
   0xf   : > { %s3582_s17 = scalar_select %p316_p1, %s3453_s27, %s318_s15  }
  0x10   : > { %p3584_p5 = por %p329_p2, %p328_p0  ;;  %p3588_p6 = por %p335_p4, %p334_p3 }
  0x11   : > { %4081 = sst [smem:[#allocation17_spill]] %s3582_s17  ;;  %p342_p8 = scmp.lt.s32.totalorder %s3457_s28, 3 }
  0x12   : > { %s4082_s18 = scalar_select %p3584_p5, 1, 0 }
  0x13   : > { %s4084_s19 = scalar_select %p3588_p6, 1, 0 }
  0x14   : > { %4083 = sst [smem:[#allocation18_spill]] %s4082_s18  ;;  %p4067_p9 = scmp.eq.s32.totalorder %s3567_s29, 0 }
  0x15   : > { %4085 = sst [smem:[#allocation19_spill]] %s4084_s19  ;;  %p3595_p10 = pnand %p2785_p7, %p342_p8 }
  0x16   : > { %s3459_s21 = smov [#allocation5]   ;;  %s3460_s24 = smov [#allocation2]  }
  0x17   : > { %s4086_s20 = scalar_select %p3595_p10, 1, 0 }
  0x18   : > { %p3194_p11 = pneg %p3595_p10  ;;  %s379_s22 = sshll.u32 %s3459_s21, 4  ;;  %s3601_s22 = int_to_ptr.vmem [resolvable:$true] %s379_s22 }
  0x19   : > { %s363_s30 = sshll.u32 %s3460_s24, 4  ;;  %s3461_s15 = smov [#allocation7]   ;;  %s3609_s30 = int_to_ptr.vmem [resolvable:$true] %s363_s30 }
  0x1a   : > { %p3605_p12 = pnand %p4067_p9, %p3194_p11  ;;  %s3611_s16 = sshll.u32 %s3461_s15, 4  ;;  %s402_s16 = int_to_ptr.vmem [resolvable:$true] %s3611_s16 }
  0x1b   : > { %s3303_s14 = scalar_lea.hbm %s4055_s7, 1024 }
  0x1c   : > { %p3304_p13 = scmp.ne.s32.totalorder %s4055_s7, %s3303_s14  ;;  %p3621_p0 = pneg %p3605_p12 }
  0x1d   : > { %p3310_p3 = scmp.lt.u32.totalorder %s3303_s14, %s4055_s7 }
  0x1e   : > { %p3306_p1 = pnand %p3621_p0, %p3304_p13 }
  0x20   : > { %p3307_p2 = pneg %p3306_p1 }
  0x22   : > { %p3312_p4 = pnand %p3310_p3, %p3307_p2 }
  0x24   : > { %3315 = shalt.err (!%p3312_p4)
}
  0x25   : > { %s3316_s27 = scalar_lea.vmem %s3601_s22, 1024  ;;  %p3324_p9 = scmp.lt.s32.totalorder %s3601_s22, %s3601_s22 }
  0x26   : > { %p3317_p7 = scmp.ne.s32.totalorder %s3601_s22, %s3316_s27  ;;  %p3325_p6 = scmp.lt.s32.totalorder %s3316_s27, %s3316_s27 }
  0x28   : > { %p3319_p8 = pnand %p3317_p7, %p3621_p0  ;;  %p3326_p13 = por %p3325_p6, %p3324_p9 }
  0x2a   : > { %p3320_p11 = pneg %p3319_p8 }
  0x2c   : > { %p3327_p1 = pnand %p3326_p13, %p3320_p11 }
  0x2e   : > { %3330 = shalt.err (!%p3327_p1)
}
  0x2f   : > { %s3462_s17 = smov 128   ;;  %s3463_s14 = smov 8  }
  0x30   : > { %3200 = dma.hbm_to_vmem [thread:$0]  (!%p3605_p12), %s4055_s7, 1024, %s3601_s22, [#allocation6], %s3462_s17, %s3462_s17, %s3463_s14  }
  0x31   : > { %s3331_s27 = scalar_lea.hbm %s4053_s5, 1024 }
  0x32   : > { %p3332_p6 = scmp.ne.s32.totalorder %s4053_s5, %s3331_s27  ;;  %p3338_p3 = scmp.lt.u32.totalorder %s3331_s27, %s4053_s5 }
  0x34   : > { %p3334_p9 = pnand %p3332_p6, %p3621_p0 }
  0x36   : > { %p3335_p2 = pneg %p3334_p9 }
  0x38   : > { %p3340_p4 = pnand %p3338_p3, %p3335_p2 }
  0x3a   : > { %3343 = shalt.err (!%p3340_p4)
}
  0x3b   : > { %s3344_s22 = scalar_lea.vmem %s3609_s30, 1024  ;;  %p3352_p13 = scmp.lt.s32.totalorder %s3609_s30, %s3609_s30 }
  0x3c   : > { %p3345_p7 = scmp.ne.s32.totalorder %s3609_s30, %s3344_s22  ;;  %p3353_p1 = scmp.lt.s32.totalorder %s3344_s22, %s3344_s22 }
  0x3e   : > { %p3347_p8 = pnand %p3345_p7, %p3621_p0  ;;  %p3354_p6 = por %p3353_p1, %p3352_p13 }
  0x40   : > { %p3348_p11 = pneg %p3347_p8 }
  0x42   : > { %p3355_p9 = pnand %p3354_p6, %p3348_p11 }
  0x44   : > { %3358 = shalt.err (!%p3355_p9)
}
  0x45   : > { %3197 = dma.hbm_to_vmem [thread:$0]  (!%p3605_p12), %s4053_s5, 1024, %s3609_s30, [#allocation3], %s3462_s17, %s3462_s17, %s3463_s14  }
  0x46   : > { %s3359_s19 = scalar_lea.hbm %s4059_s11, 2048 }
  0x47   : > { %p3360_p2 = scmp.ne.s32.totalorder %s4059_s11, %s3359_s19  ;;  %p3366_p7 = scmp.lt.u32.totalorder %s3359_s19, %s4059_s11 }
  0x49   : > { %p3362_p3 = pnand %p3360_p2, %p3621_p0 }
  0x4b   : > { %p3363_p4 = pneg %p3362_p3 }
  0x4d   : > { %p3368_p8 = pnand %p3366_p7, %p3363_p4 }
  0x4f   : > { %3371 = shalt.err (!%p3368_p8)
}
  0x50   : > { %s3372_s22 = scalar_lea.vmem %s402_s16, 2048  ;;  %p3380_p6 = scmp.lt.s32.totalorder %s402_s16, %s402_s16 }
  0x51   : > { %p3373_p11 = scmp.ne.s32.totalorder %s402_s16, %s3372_s22  ;;  %p3381_p9 = scmp.lt.s32.totalorder %s3372_s22, %s3372_s22 }
  0x53   : > { %p3375_p13 = pnand %p3373_p11, %p3621_p0  ;;  %p3382_p5 = por %p3381_p9, %p3380_p6 }
  0x55   : > { %p3376_p1 = pneg %p3375_p13 }
  0x57   : > { %p3383_p10 = pnand %p3382_p5, %p3376_p1 }
  0x59   : > { %3386 = shalt.err (!%p3383_p10)
}
  0x5a   : > { %3203 = dma.hbm_to_vmem [thread:$0]  (!%p3605_p12), %s4059_s11, 2048, %s402_s16, [#allocation6], %s3462_s17, %s3462_s17, %s3463_s14  }
  0x5b   : > { %p4089_p2 = scmp.ne.s32.totalorder %s4086_s20, 0 }
  0x5c   : > { %p4090_p0 = scmp.eq.s32.totalorder (!%p4089_p2), %s3567_s29, 0 }
  0x5d   : > { %433 = sbr.rel (%p4089_p2) target bundleno = 5301 (0x14b5), region = 72 }
  0x64   : > { %3432 = dma.done.wait (%p4090_p0), [#allocation3], 1024   ;;  %p4091_p3 = pmov %p4090_p0 }
  0x65   : > { %p4092_p5 = pmov %p4090_p0 }
  0x66   : > { %3434 = vsyncadd (%p4091_p3), [#allocation3], 4294966272 }
  0x67   : > { %3436 = dma.done.wait (%p4092_p5), [#allocation6], 3072   ;;  %p4093_p10 = pmov %p4090_p0 }
  0x68   : > { %p487_p4 = scmp.lt.s32.totalorder %s3567_s29, 1  ;;  %v494_v0 = vlaneseq  ;;  %v2796_v2 = vld [vmem:[%s4049_s1] ss:$0 sm:$0xff]  ;;  %vm528_vm1 = vcmask 261120   ;;  %v546_v14 = vld [vmem:[#allocation2 + $0x8] sm:$0xff]  ;;  %v547_v15 = vld [vmem:[#allocation2 + $0x10] sm:$0xff] }
  0x69   : > { %3438 = vsyncadd (%p4093_p10), [#allocation6], 4294964224  ;;  %v545_v13 = vld [vmem:[#allocation2] sm:$0xff]  ;;  %v3464_v16 = vmov 0.0|0.0   ;;  %v548_v18 = vld [vmem:[#allocation2 + $0x18] sm:$0xff]  ;;  %vm3465_vm2 = vmmov 0  }
  0x6a   : > { %s488_s25 = scalar_select %p487_p4, %s3567_s29, 1  ;;  %v495_v1 = vshrl.u32 %v494_v0, 7  ;;  %3120 = vmatprep.subr.bf16.mxu1 %v3464_v16  ;;  %v3121_v17 = vpack.c.bf16 %v546_v14, %v545_v13  ;;  %v3466_v19 = vmov 0.0   ;;  %v3124_v20 = vpack.c.bf16 %v548_v18, %v547_v15  ;;  %v3731_v25 = vld [vmem:[%s4051_s3] ss:$0 sm:$0xff] }
  0x6b   : > { %2944 = vmatprep.mubr.msk.f32.mxu1 %vm3465_vm2, %v3466_v19  ;;  %2957 = vmatprep.subr.mxu0 %v3466_v19  ;;  %v3736_v27 = vld [vmem:[%s4052_s4] ss:$0 sm:$0xff]  ;;  %s3467_s13 = smov 104   ;;  %s3470_s23 = smov 96   ;;  %vm646_vm3 = vcmask 64512   ;;  %vm1310_vm4 = vcmask 130048  }
  0x6c   : > { %s2795_s20 = sshll.u32 %s488_s25, 3  ;;  %s493_s17 = scalar_lea.vmem %s4050_s2, %s488_s25  ;;  %vm503_vm0 = vcmp.eq.s32.totalorder %v495_v1, 0  ;;  %2959 = vmatprep.mubr.msk.f32.mxu0 %vm3465_vm2, %v3466_v19  ;;  %3122 = vmatpush3.bf16.msra.mxu1 %v3121_v17  ;;  %v2800_v30 = vld [vmem:[%s4054_s6] ss:$0 sm:$0xff]  ;;  %vm1312_vm5 = vcmask 195584   ;;  %vm1515_vm6 = vcmask 523264  }
  0x6d   : > { %s490_s28 = scalar_lea.vmem %s4048_s0, %s2795_s20  ;;  %v2797_v4 = vld [vmem:[%s493_s17] ss:$0 sm:$0xff]  ;;  %3123 = vmatprep.subr.bf16.mxu1 %v3464_v16  ;;  %s3468_s25 = smov 120  }
  0x6e   : > { %v504_v3 = vld [vmem:[%s490_s28] sm:$0xff]  ;;  %s3469_s20 = smov 112   ;;  %s3471_s16 = smov 64  }
  0x6f   : > { %v505_v5 = vsel %vm503_vm0, %v2796_v2, %v504_v3  ;;  %s3472_s17 = smov 8   ;;  %s3473_s14 = smov 24  }
  0x70   : > { %v3714_v6 = vadd.f32 %v2797_v4, %v505_v5  ;;  %3125 = vmatpush3.bf16.msra.mxu1 %v3124_v20  ;;  %s3474_s26 = smov 16   ;;  %s4094_s24 = sld [smem:[#allocation13_spill]] }
  0x71   : > { %2947 = vmatprep.subr.mxu1 %v3466_v19  ;;  %s4095_s30 = sld [smem:[#allocation18_spill]] }
  0x72   : > { %v529_v7 = vsel %vm528_vm1, %v3714_v6, 0.0 }
  0x73   : > { %530 = vadd.xlane.f32.xlu0 %v529_v7 }
  0x76   : > { %s484_s22 = sand.u32 1, %s4094_s24  }
  0x77   : > { %s2794_s28 = sshll.u32 %s484_s22, 3  ;;  %s2672_s19 = scalar_lea.sflag [#allocation4], %s484_s22 }
  0x78   : > { %p4097_p7 = scmp.ne.s32.totalorder %s4095_s30, 0 }
 0x100   : > { %v531_v8 = vpop.xlane.xlu0 %530 }
 0x101   : > { %v533_v9 = vmul.f32 0.03125, %v531_v8 }
 0x103   : > { %v534_v10 = vsub.f32 %v3714_v6, %v533_v9 }
 0x105   : > { %v535_v11 = vmul.f32 %v534_v10, %v534_v10 }
 0x107   : > { %v536_v12 = vsel %vm528_vm1, %v535_v11, 0.0 }
 0x108   : > { %537 = vadd.xlane.f32.xlu0 %v536_v12 }
 0x195   : > { %v538_v21 = vpop.xlane.xlu0 %537 }
 0x196   : > { %v539_v22 = vmul.f32 0.03125, %v538_v21 }
 0x198   : > { %v540_v23 = vadd.f32 1e-05, %v539_v22 }
 0x19a   : > { %3263 = vrsqrt.f32 %v540_v23 }
 0x1a4   : > { %v3264_v24 = vpop.eup %3263 }
 0x1a5   : > { %v542_v26 = vmul.f32 %v3264_v24, %v534_v10 }
 0x1a7   : > { %v543_v28 = vmul.f32 %v3731_v25, %v542_v26 }
 0x1a9   : > { %v544_v29 = vadd.f32 %v3736_v27, %v543_v28 }
 0x1ab   : > { %2945 = vmatmul.mubr.msk.f32.vlgmr.msra.gmra.mrb[0].mxu1 %vm528_vm1, %v544_v29 }
 0x1ac   : > { %2949 = vmatprep.mubr.msk.f32.mxu1 %vm3465_vm2, %v3466_v19 }
 0x27e   : > { %v625_v31 = vpop.f32.mrb[0].mxu1 }
 0x27f   : > { %v626_v32 = vadd.f32 %v2800_v30, %v625_v31  ;;  %v2946_v33 = vpop.f32.mrb[1].mxu1 }
 0x281   : > { %642 = vrot.lane.b32.xlu0 %v626_v32, %s3467_s13  ;;  %638 = vrot.lane.b32.xlu1 %v626_v32, %s3468_s25  ;;  %v629_v34 = vmul.f32 0.35355338, %v626_v32 }
 0x285   : > { %640 = vrot.lane.b32.xlu1 %v626_v32, %s3469_s20  ;;  %635 = vrot.lane.b32.xlu0 %v629_v34, %s3467_s13 }
 0x289   : > { %644 = vrot.lane.b32.xlu1 %v626_v32, %s3470_s23 }
 0x28d   : > { %631 = vrot.lane.b32.xlu1 %v629_v34, %s3468_s25 }
 0x2f3   : > { %v639_v35 = vpop.permute.xlu1 %638  ;;  %v3757_v37 = vpop.permute.xlu0 %642 }
 0x2f4   : > { %721 = vrot.lane.b32.xlu1 %v639_v35, %s3470_s23 }
 0x2f7   : > { %v3753_v36 = vpop.permute.xlu1 %640  ;;  %v636_v43 = vpop.permute.xlu0 %635 }
 0x2f8   : > { %797 = vrot.lane.b32.xlu1 %v3753_v36, %s3470_s23 }
 0x2fb   : > { %v645_v38 = vpop.permute.xlu1 %644 }
 0x2fc   : > { %2948 = vmatpush3.xpose.msk.msra.mxu1 %vm646_vm3, %v645_v38  ;;  %873 = vrot.lane.b32.xlu1 %v3757_v37, %s3470_s23 }
 0x2fd   : > { %2952 = vmatprep.subr.mxu1 %v3466_v19 }
 0x2ff   : > { %2950 = vmatmul.mubr.msk.f32.vlgmr.msra.gmra.mrb[2].mxu1 %vm646_vm3, %v629_v34  ;;  %v632_v39 = vpop.permute.xlu1 %631 }
 0x300   : > { %633 = vrot.lane.b32.xlu1 %v629_v34, %s3469_s20  ;;  %2954 = vmatprep.mubr.msk.f32.mxu1 %vm3465_vm2, %v3466_v19 }
 0x366   : > { %v722_v40 = vpop.permute.xlu1 %721 }
 0x367   : > { %2953 = vmatpush3.xpose.msk.msra.mxu1 %vm646_vm3, %v722_v40  ;;  %v1317_v40 = vld [vmem:[#allocation5 + $0x18] sm:$0xff] }
 0x368   : > { %2962 = vmatprep.subr.mxu1 %v3466_v19 }
 0x36a   : > { %v798_v41 = vpop.permute.xlu1 %797  ;;  %2955 = vmatmul.mubr.msk.f32.vlgmr.msra.gmra.mrb[4].mxu1 %vm646_vm3, %v632_v39  ;;  %v1316_v39 = vld [vmem:[#allocation5 + $0x10] sm:$0xff] }
 0x36b   : > { %2958 = vmatpush3.xpose.msk.msra.mxu0 %vm646_vm3, %v798_v41  ;;  %2964 = vmatprep.mubr.msk.f32.mxu1 %vm3465_vm2, %v3466_v19  ;;  %v3130_v41 = vpack.c.bf16 %v1317_v40, %v1316_v39 }
 0x36c   : > { %2967 = vmatprep.subr.mxu0 %v3466_v19 }
 0x36e   : > { %v874_v42 = vpop.permute.xlu1 %873 }
 0x36f   : > { %2963 = vmatpush3.xpose.msk.msra.mxu1 %vm646_vm3, %v874_v42 }
 0x370   : > { %2972 = vmatprep.subr.mxu1 %v3466_v19 }
 0x372   : > { %v634_v44 = vpop.permute.xlu1 %633  ;;  %2965 = vmatmul.mubr.msk.f32.vlgmr.msra.gmra.mrb[6].mxu1 %vm646_vm3, %v636_v43 }
 0x373   : > { %2960 = vmatmul.mubr.msk.f32.vlgmr.msra.gmra.mrb[0].mxu0 %vm646_vm3, %v634_v44  ;;  %2974 = vmatprep.mubr.msk.f32.mxu1 %vm3465_vm2, %v3466_v19 }
 0x374   : > { %2969 = vmatprep.mubr.msk.f32.mxu0 %vm3465_vm2, %v3466_v19 }
 0x3d2   : > { %v717_v45 = vpop.f32.mrb[2].mxu1 }
 0x3d3   : > { %v2951_v46 = vpop.f32.mrb[3].mxu1  ;;  %v949_v47 = vsel %vm646_vm3, %v717_v45, -inf }
 0x3d4   : > { %950 = vmax.xlane.f32.xlu1 %v949_v47 }
 0x43d   : > { %v793_v48 = vpop.f32.mrb[4].mxu1 }
 0x43e   : > { %v2956_v49 = vpop.f32.mrb[5].mxu1  ;;  %v952_v50 = vsel %vm646_vm3, %v793_v48, -inf }
 0x43f   : > { %953 = vmax.xlane.f32.xlu0 %v952_v50 }
 0x445   : > { %v945_v51 = vpop.f32.mrb[6].mxu1 }
 0x446   : > { %v869_v52 = vpop.f32.mrb[0].mxu0  ;;  %v2966_v53 = vpop.f32.mrb[7].mxu1  ;;  %v958_v54 = vsel %vm646_vm3, %v945_v51, -inf }
 0x447   : > { %v2961_v55 = vpop.f32.mrb[1].mxu0  ;;  %959 = vmax.xlane.f32.xlu1 %v958_v54  ;;  %v955_v56 = vsel %vm646_vm3, %v869_v52, -inf  ;;  %v2814_v54 = vld [vmem:[%s4056_s8] ss:$0 sm:$0xff] }
 0x448   : > { %956 = vmax.xlane.f32.xlu0 %v955_v56 }
 0x458   : > { %1069 = vrot.lane.b32.xlu1 %v639_v35, %s3471_s16 }
 0x45e   : > { %993 = vrot.lane.b32.xlu0 %v626_v32, %s3471_s16 }
 0x461   : > { %v951_v57 = vpop.xlane.xlu1 %950 }
 0x462   : > { %v961_v58 = vsub.f32 %v717_v45, %v951_v57 }
 0x464   : > { %v965_v59 = vmul.f32 1.442695, %v961_v58 }
 0x466   : > { %3265 = vpow2.f32 %v965_v59 }
 0x470   : > { %v3266_v60 = vpop.eup %3265 }
 0x471   : > { %v973_v61 = vsel %vm646_vm3, %v3266_v60, 0.0 }
 0x47d   : > { %974 = vadd.xlane.f32.xlu0 %v973_v61 }
 0x4cc   : > { %v954_v62 = vpop.xlane.xlu0 %953 }
 0x4cd   : > { %v962_v63 = vsub.f32 %v793_v48, %v954_v62 }
 0x4cf   : > { %v967_v0 = vmul.f32 1.442695, %v962_v63 }
 0x4d1   : > { %3267 = vpow2.f32 %v967_v0 }
 0x4d4   : > { %v960_v1 = vpop.xlane.xlu1 %959 }
 0x4d5   : > { %v964_v2 = vsub.f32 %v945_v51, %v960_v1  ;;  %v957_v3 = vpop.xlane.xlu0 %956  ;;  %v1414_v1 = vld [vmem:[%s4057_s9] sm:$0xff] }
 0x4d6   : > { %v963_v4 = vsub.f32 %v869_v52, %v957_v3 }
 0x4d7   : > { %v971_v5 = vmul.f32 1.442695, %v964_v2  ;;  %v1415_v2 = vld [vmem:[%s4057_s9 + $0x8] sm:$0xff] }
 0x4d8   : > { %v969_v7 = vmul.f32 1.442695, %v963_v4  ;;  %v1070_v8 = vpop.permute.xlu1 %1069  ;;  %v3133_v3 = vpack.c.bf16 %v1415_v2, %v1414_v1  ;;  %v1417_v4 = vld [vmem:[%s4057_s9 + $0x18] sm:$0xff] }
 0x4d9   : > { %3269 = vpow2.f32 %v971_v5  ;;  %v994_v9 = vpop.permute.xlu0 %993  ;;  %2973 = vmatpush3.msra.mxu1 %v1070_v8  ;;  %v1501_v8 = vld [vmem:[#allocation7 + $0x8] sm:$0xff] }
 0x4da   : > { %3271 = vpow2.f32 %v969_v7  ;;  %2968 = vmatpush3.msra.mxu0 %v994_v9  ;;  %2982 = vmatprep.subr.mxu1 %v3466_v19  ;;  %v1500_v7 = vld [vmem:[#allocation7] sm:$0xff]  ;;  %v1502_v9 = vld [vmem:[#allocation7 + $0x10] sm:$0xff] }
 0x4db   : > { %v3268_v10 = vpop.eup %3267  ;;  %2977 = vmatprep.subr.mxu0 %v3466_v19 }
 0x4dc   : > { %v976_v11 = vsel %vm646_vm3, %v3268_v10, 0.0 }
 0x4dd   : > { %977 = vadd.xlane.f32.xlu1 %v976_v11  ;;  %v1503_v11 = vld [vmem:[#allocation7 + $0x18] sm:$0xff] }
 0x4e3   : > { %v3270_v12 = vpop.eup %3269 }
 0x4e4   : > { %v3272_v13 = vpop.eup %3271  ;;  %v982_v14 = vsel %vm646_vm3, %v3270_v12, 0.0 }
 0x4e5   : > { %983 = vadd.xlane.f32.xlu1 %v982_v14  ;;  %v979_v15 = vsel %vm646_vm3, %v3272_v13, 0.0 }
 0x4e6   : > { %980 = vadd.xlane.f32.xlu0 %v979_v15 }
 0x4f6   : > { %1145 = vrot.lane.b32.xlu1 %v3753_v36, %s3471_s16  ;;  %v1314_v36 = vld [vmem:[#allocation5] sm:$0xff] }
 0x4fc   : > { %1221 = vrot.lane.b32.xlu0 %v3757_v37, %s3471_s16  ;;  %v1315_v37 = vld [vmem:[#allocation5 + $0x8] sm:$0xff] }
 0x4fd   : > { %v3127_v38 = vpack.c.bf16 %v1315_v37, %v1314_v36 }
 0x50a   : > { %v975_v17 = vpop.xlane.xlu0 %974 }
 0x50b   : > { %3273 = vrcp.f32 %v975_v17 }
 0x515   : > { %v3274_v18 = vpop.eup %3273 }
 0x516   : > { %v989_v20 = vmul.f32 %v3274_v18, %v3266_v60 }
 0x518   : > { %2970 = vmatmul.mubr.msk.f32.vlgmr.msra.gmra.mrb[2].mxu0 %vm646_vm3, %v989_v20 }
 0x519   : > { %2979 = vmatprep.mubr.msk.f32.mxu0 %vm3465_vm2, %v3466_v19 }
 0x56a   : > { %v978_v21 = vpop.xlane.xlu1 %977 }
 0x56b   : > { %3275 = vrcp.f32 %v978_v21 }
 0x572   : > { %v984_v22 = vpop.xlane.xlu1 %983 }
 0x573   : > { %3277 = vrcp.f32 %v984_v22  ;;  %v981_v23 = vpop.xlane.xlu0 %980  ;;  %v1504_v22 = vld [vmem:[#allocation7 + $0x20] sm:$0xff] }
 0x574   : > { %3279 = vrcp.f32 %v981_v23  ;;  %v1505_v23 = vld [vmem:[#allocation7 + $0x28] sm:$0xff] }
 0x575   : > { %v3276_v24 = vpop.eup %3275 }
 0x576   : > { %v990_v26 = vmul.f32 %v3276_v24, %v3268_v10  ;;  %v1146_v28 = vpop.permute.xlu1 %1145  ;;  %v3139_v10 = vpack.c.bf16 %v1501_v8, %v1500_v7  ;;  %v3145_v24 = vpack.c.bf16 %v1505_v23, %v1504_v22 }
 0x577   : > { %v1222_v29 = vpop.permute.xlu0 %1221  ;;  %2978 = vmatpush3.msra.mxu0 %v1146_v28  ;;  %v1507_v28 = vld [vmem:[#allocation7 + $0x38] sm:$0xff] }
 0x578   : > { %2975 = vmatmul.mubr.msk.f32.vlgmr.msra.gmra.mrb[8].mxu1 %vm646_vm3, %v990_v26  ;;  %3126 = vmatprep.subr.bf16.mxu0 %v3464_v16  ;;  %v1506_v26 = vld [vmem:[#allocation7 + $0x30] sm:$0xff] }
 0x579   : > { %2983 = vmatpush3.msra.mxu1 %v1222_v29  ;;  %2984 = vmatprep.mubr.msk.f32.mxu1 %vm3465_vm2, %v3466_v19  ;;  %v3148_v29 = vpack.c.bf16 %v1507_v28, %v1506_v26 }
 0x57a   : > { %3132 = vmatprep.subr.bf16.mxu1 %v3464_v16 }
 0x57d   : > { %v3278_v30 = vpop.eup %3277 }
 0x57e   : > { %v3280_v31 = vpop.eup %3279  ;;  %v992_v32 = vmul.f32 %v3278_v30, %v3270_v12  ;;  %v3142_v12 = vpack.c.bf16 %v1503_v11, %v1502_v9 }
 0x57f   : > { %v991_v33 = vmul.f32 %v3280_v31, %v3272_v13 }
 0x580   : > { %2985 = vmatmul.mubr.msk.f32.vlgmr.msra.gmra.mrb[10].mxu1 %vm646_vm3, %v992_v32 }
 0x581   : > { %2980 = vmatmul.mubr.msk.f32.vlgmr.msra.gmra.mrb[4].mxu0 %vm646_vm3, %v991_v33  ;;  %3006 = vmatprep.mubr.msk.f32.mxu1 %vm3465_vm2, %v3466_v19 }
 0x582   : > { %2995 = vmatprep.mubr.msk.f32.mxu0 %vm3465_vm2, %v3466_v19  ;;  %3128 = vmatpush3.bf16.msra.mxu0 %v3127_v38 }
 0x583   : > { %3129 = vmatprep.subr.bf16.mxu0 %v3464_v16  ;;  %3134 = vmatpush3.bf16.msra.mxu1 %v3133_v3 }
 0x584   : > { %3135 = vmatprep.subr.bf16.mxu1 %v3464_v16 }
 0x586   : > { %3131 = vmatpush3.bf16.msra.mxu0 %v3130_v41 }
 0x587   : > { %3138 = vmatprep.subr.bf16.mxu0 %v3464_v16 }
 0x5eb   : > { %v1065_v34 = vpop.f32.mrb[2].mxu0 }
 0x5ec   : > { %v2971_v35 = vpop.f32.mrb[3].mxu0 }
 0x64b   : > { %v1141_v42 = vpop.f32.mrb[8].mxu1 }
 0x64c   : > { %1298 = vrot.lane.b32.xlu1 %v1141_v42, %s3472_s17  ;;  %v2976_v43 = vpop.f32.mrb[9].mxu1 }
 0x653   : > { %v1293_v44 = vpop.f32.mrb[10].mxu1 }
 0x654   : > { %v1217_v45 = vpop.f32.mrb[4].mxu0  ;;  %1306 = vrot.lane.b32.xlu1 %v1293_v44, %s3473_s14  ;;  %v2986_v46 = vpop.f32.mrb[11].mxu1 }
 0x655   : > { %1302 = vrot.lane.b32.xlu0 %v1217_v45, %s3474_s26  ;;  %v2981_v47 = vpop.f32.mrb[5].mxu0  ;;  %v1622_v45 = vld [vmem:[#allocation2 + $0x20] sm:$0xff]  ;;  %v1623_v46 = vld [vmem:[#allocation2 + $0x28] sm:$0xff] }
 0x656   : > { %v3151_v47 = vpack.c.bf16 %v1623_v46, %v1622_v45 }
 0x6be   : > { %v1299_v48 = vpop.permute.xlu1 %1298 }
 0x6bf   : > { %v1309_v49 = vsel %vm646_vm3, %v1065_v34, %v1299_v48  ;;  %v2818_v34 = vld [vmem:[%s4060_s12] ss:$0 sm:$0xff]  ;;  %v1624_v48 = vld [vmem:[#allocation2 + $0x30] sm:$0xff] }
 0x6c6   : > { %v1307_v51 = vpop.permute.xlu1 %1306 }
 0x6c7   : > { %v1303_v50 = vpop.permute.xlu0 %1302 }
 0x6c8   : > { %v1311_v52 = vsel %vm1310_vm4, %v1309_v49, %v1303_v50  ;;  %v1625_v49 = vld [vmem:[#allocation2 + $0x38] sm:$0xff] }
 0x6c9   : > { %v1313_v53 = vsel %vm1312_vm5, %v1311_v52, %v1307_v51  ;;  %v3154_v50 = vpack.c.bf16 %v1625_v49, %v1624_v48 }
 0x6ca   : > { %2996 = vmatmul.mubr.msk.f32.vlgmr.msra.gmra.mrb[6].mxu0 %vm528_vm1, %v1313_v53 }
 0x6cb   : > { %3025 = vmatprep.mubr.msk.f32.mxu0 %vm3465_vm2, %v3466_v19  ;;  %3140 = vmatpush3.bf16.msra.mxu0 %v3139_v10 }
 0x6cc   : > { %3141 = vmatprep.subr.bf16.mxu0 %v3464_v16 }
 0x6cf   : > { %3143 = vmatpush3.bf16.msra.mxu0 %v3142_v12 }
 0x6d0   : > { %3144 = vmatprep.subr.bf16.mxu0 %v3464_v16 }
 0x6d3   : > { %3146 = vmatpush3.bf16.msra.mxu0 %v3145_v24 }
 0x6d4   : > { %3147 = vmatprep.subr.bf16.mxu0 %v3464_v16 }
 0x6d7   : > { %3149 = vmatpush3.bf16.msra.mxu0 %v3148_v29 }
 0x6d8   : > { %3049 = vmatprep.subr.mxu0 %v3466_v19 }
 0x79d   : > { %v1394_v55 = vpop.f32.mrb[6].mxu0 }
 0x79e   : > { %v1395_v56 = vadd.f32 %v2814_v54, %v1394_v55  ;;  %v2997_v57 = vpop.f32.mrb[7].mxu0  ;;  %v3872_v55 = vld [vmem:[%s4051_s3 + $0x1] ss:$0 sm:$0xff] }
 0x79f   : > { %v3877_v57 = vld [vmem:[%s4052_s4 + $0x1] ss:$0 sm:$0xff] }
 0x7a0   : > { %v1398_v58 = vadd.f32 %v1395_v56, %v3714_v6  ;;  %v1416_v6 = vld [vmem:[%s4057_s9 + $0x10] sm:$0xff] }
 0x7a1   : > { %v3136_v5 = vpack.c.bf16 %v1417_v4, %v1416_v6 }
 0x7a2   : > { %v1399_v59 = vsel %vm528_vm1, %v1398_v58, 0.0 }
 0x7a3   : > { %1400 = vadd.xlane.f32.xlu0 %v1399_v59  ;;  %3137 = vmatpush3.bf16.msra.mxu1 %v3136_v5 }
 0x7a4   : > { %3150 = vmatprep.subr.bf16.mxu1 %v3464_v16 }
 0x830   : > { %v1401_v60 = vpop.xlane.xlu0 %1400 }
 0x831   : > { %v1402_v61 = vmul.f32 0.03125, %v1401_v60  ;;  %v2825_v60 = vld [vmem:[%s4054_s6 + $0x1] ss:$0 sm:$0xff] }
 0x833   : > { %v1403_v62 = vsub.f32 %v1398_v58, %v1402_v61 }
 0x835   : > { %v1404_v63 = vmul.f32 %v1403_v62, %v1403_v62 }
 0x837   : > { %v1405_v0 = vsel %vm528_vm1, %v1404_v63, 0.0 }
 0x838   : > { %1406 = vadd.xlane.f32.xlu1 %v1405_v0 }
 0x8c5   : > { %v1407_v13 = vpop.xlane.xlu1 %1406 }
 0x8c6   : > { %v1408_v14 = vmul.f32 0.03125, %v1407_v13 }
 0x8c8   : > { %v1409_v15 = vadd.f32 1e-05, %v1408_v14 }
 0x8ca   : > { %3281 = vrsqrt.f32 %v1409_v15 }
 0x8d4   : > { %v3282_v17 = vpop.eup %3281 }
 0x8d5   : > { %v1411_v18 = vmul.f32 %v3282_v17, %v1403_v62 }
 0x8d7   : > { %v1412_v20 = vmul.f32 %v3731_v25, %v1411_v18  ;;  %v2816_v25 = vld [vmem:[%s4058_s10] ss:$0 sm:$0xff] }
 0x8d9   : > { %v1413_v21 = vadd.f32 %v3736_v27, %v1412_v20 }
 0x8db   : > { %3007 = vmatmul.mubr.msk.f32.vlgmr.msra.gmra.mrb[12].mxu1 %vm528_vm1, %v1413_v21 }
 0x8dc   : > { %3036 = vmatprep.mubr.msk.f32.mxu1 %vm3465_vm2, %v3466_v19  ;;  %3152 = vmatpush3.bf16.msra.mxu1 %v3151_v47 }
 0x8dd   : > { %3153 = vmatprep.subr.bf16.mxu1 %v3464_v16 }
 0x8e0   : > { %3155 = vmatpush3.bf16.msra.mxu1 %v3154_v50 }
 0x8e1   : > { %3039 = vmatprep.subr.mxu1 %v3466_v19 }
 0x9ae   : > { %v1494_v27 = vpop.f32.mrb[12].mxu1 }
 0x9af   : > { %v1495_v30 = vadd.f32 %v2816_v25, %v1494_v27  ;;  %v3008_v31 = vpop.f32.mrb[13].mxu1 }
 0x9b1   : > { %v1498_v32 = vmax.f32 %v1495_v30, 0.0 }
 0x9b3   : > { %v1499_v33 = vmul.f32 %v1498_v32, %v1498_v32 }
 0x9b5   : > { %3026 = vmatmul.mubr.msk.f32.vlgmr.msra.gmra.mrb[8].mxu0 %vm1515_vm6, %v1499_v33 }
 0x9b6   : > { %3051 = vmatprep.mubr.msk.f32.mxu0 %vm3465_vm2, %v3466_v19 }
 0xa88   : > { %v1585_v35 = vpop.f32.mrb[8].mxu0 }
 0xa89   : > { %v1586_v36 = vadd.f32 %v2818_v34, %v1585_v35  ;;  %v3027_v37 = vpop.f32.mrb[9].mxu0 }
 0xa8b   : > { %v3861_v38 = vadd.f32 %v1586_v36, %v1398_v58 }
 0xa8d   : > { %v1606_v39 = vsel %vm528_vm1, %v3861_v38, 0.0 }
 0xa8e   : > { %1607 = vadd.xlane.f32.xlu0 %v1606_v39 }
 0xb1b   : > { %v1608_v40 = vpop.xlane.xlu0 %1607 }
 0xb1c   : > { %v1609_v41 = vmul.f32 0.03125, %v1608_v40 }
 0xb1e   : > { %v1610_v42 = vsub.f32 %v3861_v38, %v1609_v41 }
 0xb20   : > { %v1611_v43 = vmul.f32 %v1610_v42, %v1610_v42 }
 0xb22   : > { %v1612_v44 = vsel %vm528_vm1, %v1611_v43, 0.0 }
 0xb23   : > { %1613 = vadd.xlane.f32.xlu0 %v1612_v44 }
 0xbb0   : > { %v1614_v51 = vpop.xlane.xlu0 %1613 }
 0xbb1   : > { %v1615_v52 = vmul.f32 0.03125, %v1614_v51 }
 0xbb3   : > { %v1616_v53 = vadd.f32 1e-05, %v1615_v52 }
 0xbb5   : > { %3283 = vrsqrt.f32 %v1616_v53 }
 0xbbf   : > { %v3284_v54 = vpop.eup %3283 }
 0xbc0   : > { %v1618_v56 = vmul.f32 %v3284_v54, %v1610_v42 }
 0xbc2   : > { %v1619_v58 = vmul.f32 %v3872_v55, %v1618_v56 }
 0xbc4   : > { %v1620_v59 = vadd.f32 %v3877_v57, %v1619_v58 }
 0xbc6   : > { %3037 = vmatmul.mubr.msk.f32.vlgmr.msra.gmra.mrb[14].mxu1 %vm528_vm1, %v1620_v59 }
 0xbc7   : > { %3041 = vmatprep.mubr.msk.f32.mxu1 %vm3465_vm2, %v3466_v19 }
 0xc99   : > { %v1703_v61 = vpop.f32.mrb[14].mxu1 }
 0xc9a   : > { %v1704_v62 = vadd.f32 %v2825_v60, %v1703_v61  ;;  %v3038_v63 = vpop.f32.mrb[15].mxu1 }
 0xc9c   : > { %1718 = vrot.lane.b32.xlu0 %v1704_v62, %s3469_s20  ;;  %1716 = vrot.lane.b32.xlu1 %v1704_v62, %s3468_s25  ;;  %v1707_v0 = vmul.f32 0.35355338, %v1704_v62 }
 0xca0   : > { %1720 = vrot.lane.b32.xlu1 %v1704_v62, %s3467_s13 }
 0xca4   : > { %1722 = vrot.lane.b32.xlu1 %v1704_v62, %s3470_s23 }
 0xca8   : > { %1709 = vrot.lane.b32.xlu1 %v1707_v0, %s3468_s25  ;;  %s2853_s25 = sshll.u32 %s3567_s29, 7  ;;  %s3475_s29 = smov [#allocation8]  }
 0xca9   : > { %s3391_s24 = sshll.u32 %s3475_s29, 4  ;;  %s3392_s24 = int_to_ptr.vmem [resolvable:$false] %s3391_s24 }
 0xcaa   : > { %s3393_s15 = scalar_lea.vmem %s3392_s24, 256 }
 0xd0e   : > { %v3892_v1 = vpop.permute.xlu1 %1716  ;;  %v3896_v2 = vpop.permute.xlu0 %1718 }
 0xd0f   : > { %1798 = vrot.lane.b32.xlu0 %v3892_v1, %s3470_s23 }
 0xd12   : > { %v3898_v3 = vpop.permute.xlu1 %1720 }
 0xd13   : > { %1874 = vrot.lane.b32.xlu0 %v3896_v2, %s3470_s23  ;;  %1950 = vrot.lane.b32.xlu1 %v3898_v3, %s3470_s23 }
 0xd16   : > { %v1723_v6 = vpop.permute.xlu1 %1722 }
 0xd17   : > { %3040 = vmatpush3.xpose.msk.msra.mxu1 %vm646_vm3, %v1723_v6  ;;  %1711 = vrot.lane.b32.xlu0 %v1707_v0, %s3469_s20  ;;  %s486_s20 = scalar_lea.vmem [#allocation8], %s2794_s28 }
 0xd18   : > { %1713 = vrot.lane.b32.xlu1 %v1707_v0, %s3467_s13  ;;  %3044 = vmatprep.subr.mxu1 %v3466_v19  ;;  %s2685_s23 = sshll.u32 %s486_s20, 4  ;;  %s4007_s23 = int_to_ptr.vmem [resolvable:$true] %s2685_s23 }
 0xd19   : > { %s3387_s21 = scalar_lea.vmem %s4007_s23, 128  ;;  %p3394_p13 = scmp.lt.s32.totalorder %s4007_s23, %s3392_s24 }
 0xd1a   : > { %3042 = vmatmul.mubr.msk.f32.vlgmr.msra.gmra.mrb[16].mxu1 %vm646_vm3, %v1707_v0  ;;  %v1710_v4 = vpop.permute.xlu1 %1709  ;;  %p3388_p12 = scmp.ne.s32.totalorder %s4007_s23, %s3387_s21  ;;  %p3395_p1 = scmp.lt.s32.totalorder %s3393_s15, %s3387_s21 }
 0xd1b   : > { %3046 = vmatprep.mubr.msk.f32.mxu1 %vm3465_vm2, %v3466_v19 }
 0xd1c   : > { %p3389_p8 = pnand %p3388_p12, %p4097_p7  ;;  %p3396_p6 = por %p3395_p1, %p3394_p13 }
 0xd1e   : > { %p3390_p11 = pneg %p3389_p8 }
 0xd20   : > { %p3397_p9 = pnand %p3396_p6, %p3390_p11 }
 0xd81   : > { %v1799_v5 = vpop.permute.xlu0 %1798 }
 0xd82   : > { %3045 = vmatpush3.xpose.msk.msra.mxu1 %vm646_vm3, %v1799_v5  ;;  %v2393_v5 = vld [vmem:[#allocation5 + $0x38] sm:$0xff] }
 0xd83   : > { %3054 = vmatprep.subr.mxu1 %v3466_v19 }
 0xd85   : > { %v1875_v7 = vpop.permute.xlu0 %1874  ;;  %v1951_v8 = vpop.permute.xlu1 %1950  ;;  %3047 = vmatmul.mubr.msk.f32.vlgmr.msra.gmra.mrb[18].mxu1 %vm646_vm3, %v1710_v4  ;;  %v2392_v4 = vld [vmem:[#allocation5 + $0x30] sm:$0xff] }
 0xd86   : > { %3050 = vmatpush3.xpose.msk.msra.mxu0 %vm646_vm3, %v1875_v7  ;;  %3055 = vmatpush3.xpose.msk.msra.mxu1 %vm646_vm3, %v1951_v8  ;;  %v3160_v7 = vpack.c.bf16 %v2393_v5, %v2392_v4 }
 0xd87   : > { %3056 = vmatprep.mubr.msk.f32.mxu1 %vm3465_vm2, %v3466_v19  ;;  %3059 = vmatprep.subr.mxu0 %v3466_v19 }
 0xd88   : > { %3064 = vmatprep.subr.mxu1 %v3466_v19 }
 0xd89   : > { %v1712_v9 = vpop.permute.xlu0 %1711 }
 0xd8a   : > { %v1714_v10 = vpop.permute.xlu1 %1713  ;;  %3052 = vmatmul.mubr.msk.f32.vlgmr.msra.gmra.mrb[10].mxu0 %vm646_vm3, %v1712_v9 }
 0xd8b   : > { %3057 = vmatmul.mubr.msk.f32.vlgmr.msra.gmra.mrb[20].mxu1 %vm646_vm3, %v1714_v10  ;;  %3061 = vmatprep.mubr.msk.f32.mxu0 %vm3465_vm2, %v3466_v19 }
 0xd8c   : > { %3066 = vmatprep.mubr.msk.f32.mxu1 %vm3465_vm2, %v3466_v19 }
 0xded   : > { %v1794_v11 = vpop.f32.mrb[16].mxu1 }
 0xdee   : > { %v3043_v12 = vpop.f32.mrb[17].mxu1  ;;  %v2026_v13 = vsel %vm646_vm3, %v1794_v11, -inf }
 0xdef   : > { %2027 = vmax.xlane.f32.xlu0 %v2026_v13 }
 0xe58   : > { %v1870_v14 = vpop.f32.mrb[18].mxu1 }
 0xe59   : > { %v3048_v15 = vpop.f32.mrb[19].mxu1  ;;  %v2029_v17 = vsel %vm646_vm3, %v1870_v14, -inf }
 0xe5a   : > { %2030 = vmax.xlane.f32.xlu1 %v2029_v17 }
 0xe5d   : > { %v1946_v18 = vpop.f32.mrb[10].mxu0 }
 0xe5e   : > { %v2022_v20 = vpop.f32.mrb[20].mxu1  ;;  %v3053_v21 = vpop.f32.mrb[11].mxu0  ;;  %v2032_v22 = vsel %vm646_vm3, %v1946_v18, -inf }
 0xe5f   : > { %v3058_v23 = vpop.f32.mrb[21].mxu1  ;;  %2033 = vmax.xlane.f32.xlu0 %v2032_v22  ;;  %v2035_v24 = vsel %vm646_vm3, %v2022_v20, -inf  ;;  %v2840_v22 = vld [vmem:[%s4056_s8 + $0x1] ss:$0 sm:$0xff] }
 0xe63   : > { %2036 = vmax.xlane.f32.xlu0 %v2035_v24 }
 0xe6b   : > { %2070 = vrot.lane.b32.xlu1 %v1704_v62, %s3471_s16 }
 0xe7c   : > { %v2028_v26 = vpop.xlane.xlu0 %2027 }
 0xe7d   : > { %v2038_v28 = vsub.f32 %v1794_v11, %v2028_v26 }
 0xe7f   : > { %v2042_v29 = vmul.f32 1.442695, %v2038_v28 }
 0xe81   : > { %3285 = vpow2.f32 %v2042_v29 }
 0xe8b   : > { %v3286_v25 = vpop.eup %3285 }
 0xe8c   : > { %v2050_v27 = vsel %vm646_vm3, %v3286_v25, 0.0 }
 0xe8f   : > { %2051 = vadd.xlane.f32.xlu1 %v2050_v27 }
 0xee7   : > { %v2031_v30 = vpop.xlane.xlu1 %2030 }
 0xee8   : > { %v2039_v31 = vsub.f32 %v1870_v14, %v2031_v30 }
 0xeea   : > { %v2044_v32 = vmul.f32 1.442695, %v2039_v31 }
 0xeeb   : > { %v2071_v33 = vpop.permute.xlu1 %2070 }
 0xeec   : > { %3287 = vpow2.f32 %v2044_v32  ;;  %v2034_v34 = vpop.xlane.xlu0 %2033  ;;  %3060 = vmatpush3.msra.mxu0 %v2071_v33  ;;  %v2843_v33 = vld [vmem:[%s4057_s9 + $0x28] sm:$0xff] }
 0xeed   : > { %v2040_v35 = vsub.f32 %v1946_v18, %v2034_v34  ;;  %3069 = vmatprep.subr.mxu0 %v3466_v19 }
 0xeef   : > { %v2046_v36 = vmul.f32 1.442695, %v2040_v35  ;;  %v2845_v35 = vld [vmem:[%s4057_s9 + $0x38] sm:$0xff] }
 0xef0   : > { %v2037_v37 = vpop.xlane.xlu0 %2036 }
 0xef1   : > { %3289 = vpow2.f32 %v2046_v36  ;;  %v2041_v39 = vsub.f32 %v2022_v20, %v2037_v37  ;;  %v2580_v37 = vld [vmem:[#allocation7 + $0x40] sm:$0xff] }
 0xef3   : > { %v2048_v40 = vmul.f32 1.442695, %v2041_v39  ;;  %v2581_v39 = vld [vmem:[#allocation7 + $0x48] sm:$0xff] }
 0xef5   : > { %3291 = vpow2.f32 %v2048_v40  ;;  %v2582_v40 = vld [vmem:[#allocation7 + $0x50] sm:$0xff] }
 0xef6   : > { %v3288_v41 = vpop.eup %3287 }
 0xef7   : > { %v2053_v42 = vsel %vm646_vm3, %v3288_v41, 0.0 }
 0xef8   : > { %2054 = vadd.xlane.f32.xlu0 %v2053_v42  ;;  %v2583_v42 = vld [vmem:[#allocation7 + $0x58] sm:$0xff] }
 0xefb   : > { %v3290_v43 = vpop.eup %3289 }
 0xefc   : > { %v2056_v44 = vsel %vm646_vm3, %v3290_v43, 0.0 }
 0xefd   : > { %2057 = vadd.xlane.f32.xlu1 %v2056_v44 }
 0xeff   : > { %v3292_v45 = vpop.eup %3291 }
 0xf00   : > { %v2059_v46 = vsel %vm646_vm3, %v3292_v45, 0.0 }
 0xf01   : > { %2060 = vadd.xlane.f32.xlu0 %v2059_v46 }
 0xf0e   : > { %2222 = vrot.lane.b32.xlu1 %v3896_v2, %s3471_s16  ;;  %v2390_v2 = vld [vmem:[#allocation5 + $0x20] sm:$0xff] }
 0xf12   : > { %2298 = vrot.lane.b32.xlu1 %v3898_v3, %s3471_s16  ;;  %v2391_v3 = vld [vmem:[#allocation5 + $0x28] sm:$0xff] }
 0xf13   : > { %v3157_v6 = vpack.c.bf16 %v2391_v3, %v2390_v2 }
 0xf17   : > { %2146 = vrot.lane.b32.xlu0 %v3892_v1, %s3471_s16 }
 0xf1c   : > { %v2052_v47 = vpop.xlane.xlu1 %2051 }
 0xf1d   : > { %3293 = vrcp.f32 %v2052_v47 }
 0xf27   : > { %v3294_v48 = vpop.eup %3293 }
 0xf28   : > { %v2066_v49 = vmul.f32 %v3294_v48, %v3286_v25 }
 0xf2a   : > { %3062 = vmatmul.mubr.msk.f32.vlgmr.msra.gmra.mrb[12].mxu0 %vm646_vm3, %v2066_v49 }
 0xf2b   : > { %3071 = vmatprep.mubr.msk.f32.mxu0 %vm3465_vm2, %v3466_v19 }
 0xf85   : > { %v2055_v50 = vpop.xlane.xlu0 %2054 }
 0xf86   : > { %3295 = vrcp.f32 %v2055_v50 }
 0xf8a   : > { %v2058_v51 = vpop.xlane.xlu1 %2057 }
 0xf8b   : > { %3297 = vrcp.f32 %v2058_v51  ;;  %v2584_v51 = vld [vmem:[#allocation7 + $0x60] sm:$0xff] }
 0xf8e   : > { %v2223_v52 = vpop.permute.xlu1 %2222  ;;  %v2061_v53 = vpop.xlane.xlu0 %2060 }
 0xf8f   : > { %3299 = vrcp.f32 %v2061_v53  ;;  %3070 = vmatpush3.msra.mxu0 %v2223_v52  ;;  %v2585_v52 = vld [vmem:[#allocation7 + $0x68] sm:$0xff] }
 0xf90   : > { %v3296_v54 = vpop.eup %3295  ;;  %3156 = vmatprep.subr.bf16.mxu0 %v3464_v16  ;;  %v3175_v53 = vpack.c.bf16 %v2585_v52, %v2584_v51 }
 0xf91   : > { %v2067_v56 = vmul.f32 %v3296_v54, %v3288_v41  ;;  %v3169_v41 = vpack.c.bf16 %v2581_v39, %v2580_v37  ;;  %v2586_v54 = vld [vmem:[#allocation7 + $0x70] sm:$0xff] }
 0xf92   : > { %v2147_v58 = vpop.permute.xlu0 %2146  ;;  %v2299_v59 = vpop.permute.xlu1 %2298 }
 0xf93   : > { %3065 = vmatpush3.msra.mxu1 %v2147_v58 }
 0xf94   : > { %3067 = vmatmul.mubr.msk.f32.vlgmr.msra.gmra.mrb[22].mxu1 %vm646_vm3, %v2067_v56  ;;  %3074 = vmatprep.subr.mxu1 %v3466_v19  ;;  %v2587_v56 = vld [vmem:[#allocation7 + $0x78] sm:$0xff] }
 0xf95   : > { %v3298_v60 = vpop.eup %3297  ;;  %3075 = vmatpush3.msra.mxu1 %v2299_v59  ;;  %3076 = vmatprep.mubr.msk.f32.mxu1 %vm3465_vm2, %v3466_v19  ;;  %v3178_v58 = vpack.c.bf16 %v2587_v56, %v2586_v54 }
 0xf96   : > { %v2068_v61 = vmul.f32 %v3298_v60, %v3290_v43  ;;  %3162 = vmatprep.subr.bf16.mxu1 %v3464_v16  ;;  %v3172_v43 = vpack.c.bf16 %v2583_v42, %v2582_v40 }
 0xf98   : > { %3072 = vmatmul.mubr.msk.f32.vlgmr.msra.gmra.mrb[14].mxu0 %vm646_vm3, %v2068_v61 }
 0xf99   : > { %v3300_v62 = vpop.eup %3299  ;;  %3087 = vmatprep.mubr.msk.f32.mxu0 %vm3465_vm2, %v3466_v19  ;;  %3158 = vmatpush3.bf16.msra.mxu0 %v3157_v6 }
 0xf9a   : > { %v2069_v63 = vmul.f32 %v3300_v62, %v3292_v45  ;;  %3159 = vmatprep.subr.bf16.mxu0 %v3464_v16 }
 0xf9c   : > { %3077 = vmatmul.mubr.msk.f32.vlgmr.msra.gmra.mrb[24].mxu1 %vm646_vm3, %v2069_v63 }
 0xf9d   : > { %3098 = vmatprep.mubr.msk.f32.mxu1 %vm3465_vm2, %v3466_v19  ;;  %3161 = vmatpush3.bf16.msra.mxu0 %v3160_v7 }
 0xf9e   : > { %3168 = vmatprep.subr.bf16.mxu0 %v3464_v16 }
 0xffd   : > { %v2142_v0 = vpop.f32.mrb[12].mxu0 }
 0xffe   : > { %v3063_v1 = vpop.f32.mrb[13].mxu0 }
0x1067   : > { %v2218_v8 = vpop.f32.mrb[22].mxu1 }
0x1068   : > { %2375 = vrot.lane.b32.xlu0 %v2218_v8, %s3472_s17  ;;  %v3068_v9 = vpop.f32.mrb[23].mxu1 }
0x106b   : > { %v2294_v10 = vpop.f32.mrb[14].mxu0 }
0x106c   : > { %2379 = vrot.lane.b32.xlu1 %v2294_v10, %s3474_s26  ;;  %v3073_v11 = vpop.f32.mrb[15].mxu0 }
0x106f   : > { %v2370_v12 = vpop.f32.mrb[24].mxu1 }
0x1070   : > { %2383 = vrot.lane.b32.xlu0 %v2370_v12, %s3473_s14  ;;  %v3078_v13 = vpop.f32.mrb[25].mxu1  ;;  %s4096_s14 = sld [smem:[#allocation20_spill]] }
0x1076   : > { %s4005_s26 = scalar_lea.hbm %s4096_s14, %s2853_s25 }
0x10da   : > { %v2376_v14 = vpop.permute.xlu0 %2375 }
0x10db   : > { %v2386_v17 = vsel %vm646_vm3, %v2142_v0, %v2376_v14 }
0x10de   : > { %v2380_v15 = vpop.permute.xlu1 %2379 }
0x10df   : > { %v2387_v18 = vsel %vm1310_vm4, %v2386_v17, %v2380_v15 }
0x10e2   : > { %v2384_v20 = vpop.permute.xlu0 %2383 }
0x10e3   : > { %v2388_v21 = vsel %vm1312_vm5, %v2387_v18, %v2384_v20 }
0x10e4   : > { %3088 = vmatmul.mubr.msk.f32.vlgmr.msra.gmra.mrb[16].mxu0 %vm528_vm1, %v2388_v21 }
0x10e5   : > { %3117 = vmatprep.mubr.msk.f32.mxu0 %vm3465_vm2, %v3466_v19  ;;  %v2842_v19 = vld [vmem:[%s4057_s9 + $0x20] sm:$0xff]  ;;  %3170 = vmatpush3.bf16.msra.mxu0 %v3169_v41 }
0x10e6   : > { %v3163_v34 = vpack.c.bf16 %v2843_v33, %v2842_v19  ;;  %3171 = vmatprep.subr.bf16.mxu0 %v3464_v16 }
0x10e8   : > { %3164 = vmatpush3.bf16.msra.mxu1 %v3163_v34 }
0x10e9   : > { %3165 = vmatprep.subr.bf16.mxu1 %v3464_v16  ;;  %3173 = vmatpush3.bf16.msra.mxu0 %v3172_v43 }
0x10ea   : > { %3174 = vmatprep.subr.bf16.mxu0 %v3464_v16 }
0x10ed   : > { %3176 = vmatpush3.bf16.msra.mxu0 %v3175_v53 }
0x10ee   : > { %3177 = vmatprep.subr.bf16.mxu0 %v3464_v16  ;;  %v2850_v16 = vld [vmem:[%s4060_s12 + $0x1] ss:$0 sm:$0xff] }
0x10f1   : > { %3179 = vmatpush3.bf16.msra.mxu0 %v3178_v58 }
0x11b7   : > { %v2471_v23 = vpop.f32.mrb[16].mxu0 }
0x11b8   : > { %v2472_v24 = vadd.f32 %v2840_v22, %v2471_v23  ;;  %v3089_v26 = vpop.f32.mrb[17].mxu0 }
0x11ba   : > { %v2475_v28 = vadd.f32 %v2472_v24, %v3861_v38  ;;  %v2844_v38 = vld [vmem:[%s4057_s9 + $0x30] sm:$0xff] }
0x11bb   : > { %v3166_v36 = vpack.c.bf16 %v2845_v35, %v2844_v38 }
0x11bc   : > { %v2476_v29 = vsel %vm528_vm1, %v2475_v28, 0.0 }
0x11bd   : > { %2477 = vadd.xlane.f32.xlu1 %v2476_v29  ;;  %3167 = vmatpush3.bf16.msra.mxu1 %v3166_v36 }
0x124a   : > { %v2478_v25 = vpop.xlane.xlu1 %2477 }
0x124b   : > { %v2479_v27 = vmul.f32 0.03125, %v2478_v25 }
0x124d   : > { %v2480_v30 = vsub.f32 %v2475_v28, %v2479_v27 }
0x124f   : > { %v2481_v31 = vmul.f32 %v2480_v30, %v2480_v30 }
0x1251   : > { %v2482_v32 = vsel %vm528_vm1, %v2481_v31, 0.0 }
0x1252   : > { %2483 = vadd.xlane.f32.xlu0 %v2482_v32 }
0x12df   : > { %v2484_v44 = vpop.xlane.xlu0 %2483 }
0x12e0   : > { %v2485_v45 = vmul.f32 0.03125, %v2484_v44 }
0x12e2   : > { %v2486_v46 = vadd.f32 1e-05, %v2485_v45 }
0x12e4   : > { %3301 = vrsqrt.f32 %v2486_v46 }
0x12ee   : > { %v3302_v47 = vpop.eup %3301 }
0x12ef   : > { %v2488_v48 = vmul.f32 %v3302_v47, %v2480_v30 }
0x12f1   : > { %v2489_v49 = vmul.f32 %v3872_v55, %v2488_v48  ;;  %v2847_v55 = vld [vmem:[%s4058_s10 + $0x1] ss:$0 sm:$0xff] }
0x12f3   : > { %v2490_v50 = vadd.f32 %v3877_v57, %v2489_v49 }
0x12f5   : > { %3099 = vmatmul.mubr.msk.f32.vlgmr.msra.gmra.mrb[26].mxu1 %vm528_vm1, %v2490_v50 }
0x13c8   : > { %v2573_v59 = vpop.f32.mrb[26].mxu1 }
0x13c9   : > { %v2574_v57 = vadd.f32 %v2847_v55, %v2573_v59  ;;  %v3100_v60 = vpop.f32.mrb[27].mxu1 }
0x13cb   : > { %v2577_v61 = vmax.f32 %v2574_v57, 0.0 }
0x13cd   : > { %v2578_v62 = vmul.f32 %v2577_v61, %v2577_v61 }
0x13cf   : > { %3118 = vmatmul.mubr.msk.f32.vlgmr.msra.gmra.mrb[18].mxu0 %vm1515_vm6, %v2578_v62 }
0x14a2   : > { %v2665_v63 = vpop.f32.mrb[18].mxu0 }
0x14a3   : > { %v2666_v0 = vadd.f32 %v2850_v16, %v2665_v63  ;;  %v3119_v1 = vpop.f32.mrb[19].mxu0 }
0x14a5   : > { %v2669_v2 = vadd.f32 %v2666_v0, %v2475_v28 }
0x14a7   : > { %2670 = vst.msk [vmem:[%s486_s20] sm:$0xff] %vm528_vm1, %v2669_v2 }
0x14a8   : > { %3400 = shalt.err (!%p3397_p9)
}
0x14a9   : > { %s3401_s27 = scalar_lea.hbm %s4005_s26, 128  ;;  %s3405_s18 = scalar_lea.hbm %s4096_s14, 256 }
0x14aa   : > { %p3402_p2 = scmp.ne.s32.totalorder %s4005_s26, %s3401_s27  ;;  %p3406_p5 = scmp.lt.u32.totalorder %s4005_s26, %s4096_s14 }
0x14ab   : > { %p3407_p10 = scmp.lt.u32.totalorder %s3405_s18, %s3401_s27  ;;  %p3409_p12 = scmp.lt.u32.totalorder %s3401_s27, %s4005_s26 }
0x14ac   : > { %p3403_p0 = pnand %p3402_p2, %p4097_p7 }
0x14ad   : > { %p3408_p4 = por %p3407_p10, %p3406_p5 }
0x14ae   : > { %p3404_p3 = pneg %p3403_p0 }
0x14af   : > { %p3410_p8 = por %p3409_p12, %p3408_p4 }
0x14b1   : > { %p3411_p11 = pnand %p3410_p8, %p3404_p3 }
0x14b3   : > { %3414 = shalt.err (!%p3411_p11)
}
0x14b4   : > { %3192 = dma.vmem_to_hbm [thread:$0]  (%p4097_p7), %s4007_s23, 128, %s4005_s26, %s2672_s19  }
0x14b5 PF: > { %s4098_s20 = sld [smem:[#allocation15_spill]]  ;;  %s4099_s16 = sld [smem:[#allocation12_spill]] }
0x14b6   : > { %s4100_s17 = sld [smem:[#allocation19_spill]] }
0x14bb   : > { %p3214_p13 = scmp.ge.s32.totalorder %s4098_s20, 2  ;;  %s2697_s21 = sand.u32 1, %s4099_s16  }
0x14bc   : > { %p4101_p1 = scmp.ne.s32.totalorder %s4100_s17, 0  ;;  %s2698_s29 = scalar_lea.sflag [#allocation4], %s2697_s21 }
0x14be   : > { %p3205_p6 = pnand %p3214_p13, %p4101_p1 }
0x14c0   : > { %3440 = dma.done.wait (!%p3205_p6), %s2698_s29, 128  }
0x14c1   : > { %3442 = vsyncadd (!%p3205_p6), %s2698_s29, 4294967168  ;;  %s4102_s28 = sld [smem:[#allocation16_spill]]  ;;  %s4103_s25 = sld [smem:[#allocation13_spill]] }
0x14c2   : > { %s4104_s26 = sld [smem:[#allocation14_spill]]  ;;  %s4105_s27 = sld [smem:[#allocation17_spill]] }
0x14c7   : > { %p25_p9 = scmp.ge.s32.totalorder %s4102_s28, 4  }
0x14c9   :  { %27 = sbr.rel (!%p25_p9) target bundleno = 7 (0x7), region = 133 }
0x14d0   :  { %2703 = vsyncpa [#allocation3], 1 }
0x14d1   :  { %2705 = vsyncpa [#allocation3 + $0x1], 1 }
0x14d2   :  { %2706 = vsyncpa [#allocation6], 1 }
0x14d3   :  { %2707 = vsyncpa [#allocation4], 1 }
0x14d4   :  { %2709 = vsyncpa [#allocation4 + $0x1], 1 }

</bundles_post_ra>
